<compile_context>
chip_gen: v7x
topology: tpu7x:2x2x1
jax: 0.10.0
libtpu: 0.0.40
codegen_flags: <defaults>
</compile_context>

<pallas_src>
import math
import functools

import jax
import jax.numpy as jnp
from jax.experimental import pallas as pl
from jax.experimental.pallas import tpu as pltpu


_VMEM_LIMIT = 48 * 1024 * 1024


def _round_up(n, k):
    return (n + k - 1) // k * k


def find_multiple(n, k):
    return n if n % k == 0 else n + k - (n % k)


# ----------------------------------------------------------------------------
# Tiled bf16 matmul kernels (MXU) with fused bias / SiLU epilogue
# ----------------------------------------------------------------------------
def _matmul_bias_kernel(x_ref, w_ref, b_ref, o_ref, acc_ref, *, act):
    @pl.when(pl.program_id(2) == 0)
    def _():
        acc_ref[...] = jnp.zeros_like(acc_ref)

    acc_ref[...] += jnp.dot(x_ref[...], w_ref[...],
                            preferred_element_type=jnp.float32)

    @pl.when(pl.program_id(2) == pl.num_programs(2) - 1)
    def _():
        y = acc_ref[...] + b_ref[...]
        if act == "silu":
            y = y * jax.nn.sigmoid(y)
        o_ref[...] = y.astype(o_ref.dtype)


def _matmul_kernel(x_ref, w_ref, o_ref, acc_ref, *, act):
    @pl.when(pl.program_id(2) == 0)
    def _():
        acc_ref[...] = jnp.zeros_like(acc_ref)

    acc_ref[...] += jnp.dot(x_ref[...], w_ref[...],
                            preferred_element_type=jnp.float32)

    @pl.when(pl.program_id(2) == pl.num_programs(2) - 1)
    def _():
        y = acc_ref[...]
        if act == "silu":
            y = y * jax.nn.sigmoid(y)
        o_ref[...] = y.astype(o_ref.dtype)


def linear(x, w, b=None, act="none", out_dtype=jnp.bfloat16,
           tm=256, tn=256, tk=512):
    """x: (M, K), w: (K, N) (torch W^T layout), b: (N,) or None.

    bf16 operands, f32 accumulation, optional fused bias + SiLU epilogue.
    Padding / output slicing are no-ops when shapes already divide the tiles.
    """
    M, K = x.shape
    N = w.shape[1]
    tm = min(tm, _round_up(M, 8))
    tn = min(tn, _round_up(N, 128))
    tk = min(tk, _round_up(K, 128))
    Mp, Kp, Np = _round_up(M, tm), _round_up(K, tk), _round_up(N, tn)

    xb = x.astype(jnp.bfloat16)
    if (Mp, Kp) != (M, K):
        xb = jnp.pad(xb, ((0, Mp - M), (0, Kp - K)))
    wb = w.astype(jnp.bfloat16)
    if (Kp, Np) != (K, N):
        wb = jnp.pad(wb, ((0, Kp - K), (0, Np - N)))

    grid = (Mp // tm, Np // tn, Kp // tk)
    in_specs = [
        pl.BlockSpec((tm, tk), lambda i, j, k: (i, k)),
        pl.BlockSpec((tk, tn), lambda i, j, k: (k, j)),
    ]
    args = [xb, wb]
    if b is not None:
        bb = b.astype(jnp.float32).reshape(1, N)
        if Np != N:
            bb = jnp.pad(bb, ((0, 0), (0, Np - N)))
        in_specs.append(pl.BlockSpec((1, tn), lambda i, j, k: (0, j)))
        args.append(bb)
        kernel = functools.partial(_matmul_bias_kernel, act=act)
    else:
        kernel = functools.partial(_matmul_kernel, act=act)

    out = pl.pallas_call(
        kernel,
        grid=grid,
        in_specs=in_specs,
        out_specs=pl.BlockSpec((tm, tn), lambda i, j, k: (i, j)),
        out_shape=jax.ShapeDtypeStruct((Mp, Np), out_dtype),
        scratch_shapes=[pltpu.VMEM((tm, tn), jnp.float32)],
        compiler_params=pltpu.CompilerParams(
            dimension_semantics=("parallel", "parallel", "arbitrary"),
            vmem_limit_bytes=_VMEM_LIMIT,
        ),
    )(*args)
    if (Mp, Np) != (M, N):
        out = out[:M, :N]
    return out


# ----------------------------------------------------------------------------
# SwiGLU feed-forward, chunked over the intermediate dimension
# ----------------------------------------------------------------------------
def _ffn_kernel(x_ref, w1_ref, w3_ref, w2_ref, o_ref, acc_ref):
    @pl.when(pl.program_id(1) == 0)
    def _():
        acc_ref[...] = jnp.zeros_like(acc_ref)

    x = x_ref[...]                                               # (tm, H) bf16
    a = jnp.dot(x, w1_ref[...], preferred_element_type=jnp.float32)   # (tm, tc)
    g = jnp.dot(x, w3_ref[...], preferred_element_type=jnp.float32)   # (tm, tc)
    gated = (a * jax.nn.sigmoid(a)) * g
    acc_ref[...] += jnp.dot(gated.astype(jnp.bfloat16), w2_ref[...],
                            preferred_element_type=jnp.float32)

    @pl.when(pl.program_id(1) == pl.num_programs(1) - 1)
    def _():
        o_ref[...] = acc_ref[...].astype(o_ref.dtype)


def ffn_swiglu(x, w1, w3, w2, out_dtype=jnp.bfloat16, tm=256):
    """x: (M, H), w1/w3: (H, inter), w2: (inter, H); inter chunked so VMEM is bounded."""
    M, H = x.shape
    inter = w1.shape[1]
    tm = min(tm, _round_up(M, 8))
    Mp = _round_up(M, tm)
    xb = x.astype(jnp.bfloat16)
    if Mp != M:
        xb = jnp.pad(xb, ((0, Mp - M), (0, 0)))

    tc = inter
    for cand in (512, 256, 128):
        if inter % cand == 0:
            tc = cand
            break

    out = pl.pallas_call(
        _ffn_kernel,
        grid=(Mp // tm, inter // tc),
        in_specs=[
            pl.BlockSpec((tm, H), lambda i, c: (i, 0)),
            pl.BlockSpec((H, tc), lambda i, c: (0, c)),
            pl.BlockSpec((H, tc), lambda i, c: (0, c)),
            pl.BlockSpec((tc, H), lambda i, c: (c, 0)),
        ],
        out_specs=pl.BlockSpec((tm, H), lambda i, c: (i, 0)),
        out_shape=jax.ShapeDtypeStruct((Mp, H), out_dtype),
        scratch_shapes=[pltpu.VMEM((tm, H), jnp.float32)],
        compiler_params=pltpu.CompilerParams(
            dimension_semantics=("parallel", "arbitrary"),
            vmem_limit_bytes=_VMEM_LIMIT,
        ),
    )(xb, w1.astype(jnp.bfloat16), w3.astype(jnp.bfloat16), w2.astype(jnp.bfloat16))
    return out[:M] if Mp != M else out


# ----------------------------------------------------------------------------
# Attention: grid (B, q_tiles), per-head loop in-kernel, fused RoPE, key-padding
# mask built from scalar-prefetched lengths, lane-dense (1, tq, H) bf16 output.
# ----------------------------------------------------------------------------
def _rope_rotate_half(x, cos, sin):
    h2 = x.shape[-1] // 2
    x1 = x[:, :h2]
    x2 = x[:, h2:]
    rot = jnp.concatenate([-x2, x1], axis=-1)
    return x * cos + rot * sin


def _attn_kernel(lens_ref, q_ref, k_ref, v_ref, cos_ref, sin_ref, o_ref,
                 *, nh, hd, tq, scale):
    b = pl.program_id(0)
    i = pl.program_id(1)
    Lk = k_ref.shape[1]

    # key-padding mask (matches torch key_padding_mask semantics)
    valid = jax.lax.broadcasted_iota(jnp.int32, (1, Lk), 1) < lens_ref[b]

    qoff = pl.multiple_of(i * tq, tq)
    cos_q = cos_ref[pl.ds(qoff, tq), :]
    sin_q = sin_ref[pl.ds(qoff, tq), :]
    cos_k = cos_ref[...]
    sin_k = sin_ref[...]

    qb = q_ref[0].astype(jnp.float32)        # (tq, H)
    kb = k_ref[0].astype(jnp.float32)        # (Lk, H)
    vb = v_ref[0]                            # (Lk, H) bf16

    outs = []
    for h in range(nh):                      # static unroll; nh is small
        lo = h * hd
        qh = _rope_rotate_half(qb[:, lo:lo + hd], cos_q, sin_q)
        kh = _rope_rotate_half(kb[:, lo:lo + hd], cos_k, sin_k)
        s = jax.lax.dot_general(qh, kh, (((1,), (1,)), ((), ())),
                                preferred_element_type=jnp.float32) * scale  # (tq, Lk)
        s = jnp.where(valid, s, -1e30)
        s = s - jnp.max(s, axis=-1, keepdims=True)
        p = jnp.exp(s)
        p = p * pl.reciprocal(jnp.sum(p, axis=-1, keepdims=True), approx=True)
        outs.append(jnp.dot(p.astype(jnp.bfloat16), vb[:, lo:lo + hd],
                            preferred_element_type=jnp.float32))
    # single lane-dense store (last dim = H)
    o_ref[0] = jnp.concatenate(outs, axis=-1).astype(o_ref.dtype)


def mha(q, k, v, lens, *, nh, hd):
    """q,k,v: (B, L, H) lane-dense; lens: (B,) valid key lengths.  Returns (B, L, H) bf16."""
    B, L, H = q.shape
    scale = 1.0 / math.sqrt(hd)
    tq = min(128, _round_up(L, 8))
    Lp = _round_up(L, tq)
    if Lp != L:
        pad = ((0, 0), (0, Lp - L), (0, 0))
        q = jnp.pad(q, pad)
        k = jnp.pad(k, pad)
        v = jnp.pad(v, pad)

    # RoPE tables (rotate-half convention: cos/sin halves duplicated along lanes).
    # TODO(synk): gpt-fast uses interleaved-pair RoPE; rotate-half is used here for
    # TPU-friendly contiguous-half slices (equivalent up to a fixed permutation of wqkv).
    pos = jnp.arange(Lp, dtype=jnp.float32)
    inv = 1.0 / (10000.0 ** (jnp.arange(0, hd, 2, dtype=jnp.float32) / hd))
    ang = pos[:, None] * inv[None, :]
    cos = jnp.concatenate([jnp.cos(ang), jnp.cos(ang)], axis=-1)   # (Lp, hd)
    sin = jnp.concatenate([jnp.sin(ang), jnp.sin(ang)], axis=-1)

    out = pl.pallas_call(
        functools.partial(_attn_kernel, nh=nh, hd=hd, tq=tq, scale=scale),
        grid_spec=pltpu.PrefetchScalarGridSpec(
            num_scalar_prefetch=1,
            grid=(B, Lp // tq),
            in_specs=[
                pl.BlockSpec((1, tq, H), lambda b, i, lens: (b, i, 0)),
                pl.BlockSpec((1, Lp, H), lambda b, i, lens: (b, 0, 0)),
                pl.BlockSpec((1, Lp, H), lambda b, i, lens: (b, 0, 0)),
                pl.BlockSpec((Lp, hd), lambda b, i, lens: (0, 0)),
                pl.BlockSpec((Lp, hd), lambda b, i, lens: (0, 0)),
            ],
            out_specs=pl.BlockSpec((1, tq, H), lambda b, i, lens: (b, i, 0)),
        ),
        out_shape=jax.ShapeDtypeStruct((B, Lp, H), jnp.bfloat16),
        compiler_params=pltpu.CompilerParams(
            dimension_semantics=("parallel", "parallel"),
            vmem_limit_bytes=_VMEM_LIMIT,
        ),
    )(lens.astype(jnp.int32), q.astype(jnp.bfloat16), k.astype(jnp.bfloat16),
      v.astype(jnp.bfloat16), cos, sin)
    return out[:, :L] if Lp != L else out


# ----------------------------------------------------------------------------
# Plain-JAX glue (elementwise helpers + tiny matmuls where pallas overhead dominates)
# ----------------------------------------------------------------------------
def dense_xla(x, w, b=None, act="none"):
    y = jnp.dot(x.astype(jnp.float32), w.astype(jnp.float32))
    if b is not None:
        y = y + b
    if act == "silu":
        y = jax.nn.silu(y)
    return y


def rmsnorm(x, w, eps=1e-5):
    return x * jax.lax.rsqrt(jnp.mean(x * x, axis=-1, keepdims=True) + eps) * w


def timestep_embedding(t, dim=256, max_period=10000.0, scale=1000.0):
    half = dim // 2
    freqs = jnp.exp(-math.log(max_period) * jnp.arange(half, dtype=jnp.float32) / half)
    args = scale * t[:, None].astype(jnp.float32) * freqs[None, :]
    return jnp.concatenate([jnp.cos(args), jnp.sin(args)], axis=-1)


# ----------------------------------------------------------------------------
# Transformer (DiT block: AdaLN + RoPE attention + SwiGLU FFN)
# ----------------------------------------------------------------------------
def transformer_forward(params, x, t1, lens, cfg):
    B, L, H = x.shape
    nh, hd = cfg["num_heads"], cfg["head_dim"]
    depth = cfg["depth"]

    # AdaLN modulation for all layers, hoisted out of the layer loop (t1 is loop-invariant)
    t_act = jax.nn.silu(t1)
    mods = dense_xla(t_act, params["ada_w_all"], params["ada_b_all"])   # (B, depth*6H)
    mods = mods.reshape(B, depth, 6, H)

    for li, lp in enumerate(params["layers"]):
        sh_msa = mods[:, li, 0][:, None, :]
        sc_msa = mods[:, li, 1][:, None, :]
        g_msa = mods[:, li, 2][:, None, :]
        sh_mlp = mods[:, li, 3][:, None, :]
        sc_mlp = mods[:, li, 4][:, None, :]
        g_mlp = mods[:, li, 5][:, None, :]

        # --- attention ---
        # TODO(synk): rmsnorm+AdaLN scale/shift and the gated residual add could be fused
        # into the qkv / wo kernel prologue/epilogue to save two HBM round trips per layer.
        h = rmsnorm(x, lp["attn_norm"]) * (1.0 + sc_msa) + sh_msa
        qkv = linear(h.reshape(B * L, H), lp["wqkv"],
                     out_dtype=jnp.bfloat16).reshape(B, L, 3 * H)
        q = qkv[..., :H]
        k = qkv[..., H:2 * H]
        v = qkv[..., 2 * H:]
        o = mha(q, k, v, lens, nh=nh, hd=hd)                          # (B, L, H) bf16
        o = linear(o.reshape(B * L, H), lp["wo"],
                   out_dtype=jnp.bfloat16).reshape(B, L, H)
        x = x + g_msa * o.astype(jnp.float32)

        # --- SwiGLU feed-forward (chunked over inter) ---
        f = rmsnorm(x, lp["ffn_norm"]) * (1.0 + sc_mlp) + sh_mlp
        ff = ffn_swiglu(f.reshape(B * L, H), lp["w1"], lp["w3"], lp["w2"],
                        out_dtype=jnp.bfloat16).reshape(B, L, H)
        x = x + g_mlp * ff.astype(jnp.float32)

    return rmsnorm(x, params["final_norm"])


# ----------------------------------------------------------------------------
# DiT forward (eval mode: class/content dropout disabled, as in inference)
# ----------------------------------------------------------------------------
def dit_forward(params, x, prompt_x, x_lens, t, style, cond, cfg):
    B, C, T = x.shape
    H = cfg["hidden_dim"]

    # timestep embedder: sinusoidal + 2-layer MLP (tiny M -> plain XLA matmuls)
    t_freq = timestep_embedding(t, cfg["freq_emb"])
    t1 = dense_xla(t_freq, params["t_mlp0_w"], params["t_mlp0_b"], act="silu")
    t1 = dense_xla(t1, params["t_mlp2_w"], params["t_mlp2_b"])          # (B, H)

    cond_p = linear(cond.reshape(B * T, -1), params["cond_proj_w"], params["cond_proj_b"],
                    out_dtype=jnp.bfloat16).reshape(B, T, H)

    x_t = jnp.transpose(x, (0, 2, 1)).astype(jnp.bfloat16)              # (B, T, C)
    px_t = jnp.transpose(prompt_x, (0, 2, 1)).astype(jnp.bfloat16)      # (B, T, C)
    x_in = jnp.concatenate([x_t, px_t, cond_p], axis=-1)                # (B, T, 2C+H)
    x_in = linear(x_in.reshape(B * T, -1), params["merge_w"], params["merge_b"],
                  out_dtype=jnp.float32).reshape(B, T, H)

    style_e = dense_xla(style, params["style_w"], params["style_b"])    # (B, H)
    if cfg["style_as_token"]:
        x_in = jnp.concatenate([style_e[:, None, :], x_in], axis=1)
    if cfg["time_as_token"]:
        x_in = jnp.concatenate([t1[:, None, :], x_in], axis=1)

    lens = x_lens + int(cfg["style_as_token"]) + int(cfg["time_as_token"])

    # TODO(synk): uvit_skip_connection path not implemented (flag is False in this config).
    x_res = transformer_forward(params, x_in, t1, lens, cfg)

    if cfg["time_as_token"]:
        x_res = x_res[:, 1:]
    if cfg["style_as_token"]:
        x_res = x_res[:, 1:]

    Tr = x_res.shape[1]
    y = linear(x_res.reshape(B * Tr, H), params["final0_w"], params["final0_b"],
               act="silu", out_dtype=jnp.bfloat16)
    y = linear(y, params["final1_w"], params["final1_b"],
               out_dtype=jnp.float32).reshape(B, Tr, C)
    return jnp.transpose(y, (0, 2, 1))                                  # (B, C, T)


# ----------------------------------------------------------------------------
# Deterministic parameter init (matmul weights stored (in, out) = torch W^T)
# ----------------------------------------------------------------------------
def init_params(key, cfg):
    H, C = cfg["hidden_dim"], cfg["in_channels"]
    CD, SD = cfg["content_dim"], cfg["style_encoder_dim"]
    inter = cfg["ffn_inter"]
    depth = cfg["depth"]
    keys = iter(jax.random.split(key, 32 + 8 * depth))

    def w(shape, dtype=jnp.bfloat16):
        return (jax.random.normal(next(keys), shape, jnp.float32) * 0.02).astype(dtype)

    def b(n):
        return jnp.zeros((n,), jnp.float32)

    params = dict(
        t_mlp0_w=w((cfg["freq_emb"], H), jnp.float32), t_mlp0_b=b(H),
        t_mlp2_w=w((H, H), jnp.float32), t_mlp2_b=b(H),
        cond_proj_w=w((CD, H)), cond_proj_b=b(H),
        merge_w=w((2 * C + H, H)), merge_b=b(H),
        style_w=w((SD, H), jnp.float32), style_b=b(H),
        final0_w=w((H, H)), final0_b=b(H),
        final1_w=w((H, C)), final1_b=b(C),
        final_norm=jnp.ones((H,), jnp.float32),
        # AdaLN weights for all layers stacked -> single matmul before the layer loop
        ada_w_all=w((H, depth * 6 * H), jnp.float32),
        ada_b_all=b(depth * 6 * H),
        layers=[],
    )
    # note: x_embedder (weight-normed Linear) exists in __init__ but is unused in forward.
    for _ in range(depth):
        params["layers"].append(dict(
            attn_norm=jnp.ones((H,), jnp.float32),
            ffn_norm=jnp.ones((H,), jnp.float32),
            wqkv=w((H, 3 * H)),
            wo=w((H, H)),
            w1=w((H, inter)),
            w3=w((H, inter)),
            w2=w((inter, H)),
        ))
    return params


# ----------------------------------------------------------------------------
if __name__ == "__main__":
    cfg = dict(
        time_as_token=False,
        style_as_token=False,
        uvit_skip_connection=False,
        block_size=32,
        depth=2,
        num_heads=2,
        hidden_dim=32,
        head_dim=16,
        in_channels=4,
        content_dim=8,
        style_encoder_dim=16,
        freq_emb=256,
    )
    cfg["ffn_inter"] = find_multiple(int(2 * 4 * cfg["hidden_dim"] / 3), 256)

    key = jax.random.PRNGKey(0)
    kp, kx, kpx, kt, ks, kc = jax.random.split(key, 6)

    B, C, T = 2, cfg["in_channels"], 8
    x = jax.random.normal(kx, (B, C, T), jnp.float32)
    prompt_x = jax.random.normal(kpx, (B, C, T), jnp.float32)
    x_lens = jnp.array([8, 5], jnp.int32)
    t = jax.random.uniform(kt, (B,), jnp.float32)
    style = jax.random.normal(ks, (B, cfg["style_encoder_dim"]), jnp.float32)
    cond = jax.random.normal(kc, (B, T, cfg["content_dim"]), jnp.float32)

    params = init_params(kp, cfg)

    fwd = jax.jit(functools.partial(dit_forward, cfg=cfg))
    out = fwd(params, x, prompt_x, x_lens, t, style, cond)
    out = jax.block_until_ready(out)
    assert out.shape == (B, C, T) and out.dtype == jnp.float32
    print("KERNEL_OK")
</pallas_src>

<mosaic_0001>
module attributes {stable_mosaic.version = 11 : i64} {
  func.func @_matmul_bias_kernel(%arg0: i32, %arg1: i32, %arg2: i32, %arg3: memref<16x128xbf16, #tpu.memory_space<vmem>>, %arg4: memref<128x128xbf16, #tpu.memory_space<vmem>>, %arg5: memref<1x128xf32, #tpu.memory_space<vmem>>, %arg6: memref<16x128xbf16, #tpu.memory_space<vmem>>, %arg7: memref<16x128xf32, #tpu.memory_space<vmem>>) attributes {dimension_semantics = [#tpu.dimension_semantics<parallel>, #tpu.dimension_semantics<parallel>, #tpu.dimension_semantics<arbitrary>], iteration_bounds = array<i64: 1, 1, 1>, scalar_prefetch = 0 : i64, scratch_operands = 1 : i64, tpu.core_type = #tpu.core_type<tc>, window_params = [{transform_indices = @transform_0, window_bounds = array<i64: 16, 128>}, {transform_indices = @transform_1, window_bounds = array<i64: 128, 128>}, {transform_indices = @transform_2, window_bounds = array<i64: 1, 128>}, {transform_indices = @transform_3, window_bounds = array<i64: 16, 128>}]} {
    %c0_i32 = arith.constant 0 : i32
    %0 = arith.cmpi eq, %arg2, %c0_i32 : i32
    %1 = arith.extui %0 : i1 to i32
    %c0_i32_0 = arith.constant 0 : i32
    %2 = arith.cmpi ne, %1, %c0_i32_0 : i32
    scf.if %2 {
      %cst_10 = arith.constant 0.000000e+00 : f32
      %12 = vector.broadcast %cst_10 : f32 to vector<16x128xf32>
      %c0_11 = arith.constant 0 : index
      %c0_12 = arith.constant 0 : index
      %13 = vector.load %arg7[%c0_11, %c0_12] : memref<16x128xf32, #tpu.memory_space<vmem>>, vector<16x128xf32>
      tpu.vector_store %arg7[%c0_11, %c0_12], %12 {strides = array<i32>} : memref<16x128xf32, #tpu.memory_space<vmem>>, vector<16x128xf32>,
    } else {
    }
    %c0 = arith.constant 0 : index
    %c0_1 = arith.constant 0 : index
    %3 = vector.load %arg7[%c0, %c0_1] : memref<16x128xf32, #tpu.memory_space<vmem>>, vector<16x128xf32>
    %c0_2 = arith.constant 0 : index
    %c0_3 = arith.constant 0 : index
    %4 = vector.load %arg3[%c0_2, %c0_3] : memref<16x128xbf16, #tpu.memory_space<vmem>>, vector<16x128xbf16>
    %c0_4 = arith.constant 0 : index
    %c0_5 = arith.constant 0 : index
    %5 = vector.load %arg4[%c0_4, %c0_5] : memref<128x128xbf16, #tpu.memory_space<vmem>>, vector<128x128xbf16>
    %cst = arith.constant dense<0.000000e+00> : vector<16x128xf32>
    %6 = tpu.matmul %4, %5, %cst {dimension_numbers = #tpu.dot_dimension_numbers<[1], [0], [0], [1], [0, 0, 1, 1], [], []>} : vector<16x128xbf16>, vector<128x128xbf16>, vector<16x128xf32> -> vector<16x128xf32>
    %7 = arith.addf %3, %6 : vector<16x128xf32>
    %c0_6 = arith.constant 0 : index
    %c0_7 = arith.constant 0 : index
    %8 = vector.load %arg7[%c0_6, %c0_7] : memref<16x128xf32, #tpu.memory_space<vmem>>, vector<16x128xf32>
    tpu.vector_store %arg7[%c0_6, %c0_7], %7 {strides = array<i32>} : memref<16x128xf32, #tpu.memory_space<vmem>>, vector<16x128xf32>,
    %c0_i32_8 = arith.constant 0 : i32
    %9 = arith.cmpi eq, %arg2, %c0_i32_8 : i32
    %10 = arith.extui %9 : i1 to i32
    %c0_i32_9 = arith.constant 0 : i32
    %11 = arith.cmpi ne, %10, %c0_i32_9 : i32
    scf.if %11 {
      %c0_10 = arith.constant 0 : index
      %c0_11 = arith.constant 0 : index
      %12 = vector.load %arg7[%c0_10, %c0_11] : memref<16x128xf32, #tpu.memory_space<vmem>>, vector<16x128xf32>
      %c0_12 = arith.constant 0 : index
      %c0_13 = arith.constant 0 : index
      %13 = vector.load %arg5[%c0_12, %c0_13] : memref<1x128xf32, #tpu.memory_space<vmem>>, vector<1x128xf32>
      %14 = vector.broadcast %13 : vector<1x128xf32> to vector<16x128xf32>
      %15 = arith.addf %12, %14 : vector<16x128xf32>
      %16 = arith.truncf %15 : vector<16x128xf32> to vector<16x128xbf16>
      %c0_14 = arith.constant 0 : index
      %c0_15 = arith.constant 0 : index
      %17 = vector.load %arg6[%c0_14, %c0_15] : memref<16x128xbf16, #tpu.memory_space<vmem>>, vector<16x128xbf16>
      tpu.vector_store %arg6[%c0_14, %c0_15], %16 {strides = array<i32>} : memref<16x128xbf16, #tpu.memory_space<vmem>>, vector<16x128xbf16>,
    } else {
    }
    return
  }
  func.func @transform_0(%arg0: i32, %arg1: i32, %arg2: i32) -> (i32, i32) {
    %c0_i32 = arith.constant 0 : i32
    return %arg0, %arg2 : i32, i32
  }
  func.func @transform_1(%arg0: i32, %arg1: i32, %arg2: i32) -> (i32, i32) {
    %c0_i32 = arith.constant 0 : i32
    return %arg2, %arg1 : i32, i32
  }
  func.func @transform_2(%arg0: i32, %arg1: i32, %arg2: i32) -> (i32, i32) {
    %c0_i32 = arith.constant 0 : i32
    %c0_i32_0 = arith.constant 0 : i32
    return %c0_i32, %arg1 : i32, i32
  }
  func.func @transform_3(%arg0: i32, %arg1: i32, %arg2: i32) -> (i32, i32) {
    %c0_i32 = arith.constant 0 : i32
    return %arg0, %arg1 : i32, i32
  }
}

module attributes {stable_mosaic.version = 11 : i64} {
  func.func @_matmul_bias_kernel(%arg0: i32, %arg1: i32, %arg2: i32, %arg3: memref<16x128xbf16, #tpu.memory_space<vmem>>, %arg4: memref<128x128xbf16, #tpu.memory_space<vmem>>, %arg5: memref<1x128xf32, #tpu.memory_space<vmem>>, %arg6: memref<16x128xf32, #tpu.memory_space<vmem>>, %arg7: memref<16x128xf32, #tpu.memory_space<vmem>>) attributes {dimension_semantics = [#tpu.dimension_semantics<parallel>, #tpu.dimension_semantics<parallel>, #tpu.dimension_semantics<arbitrary>], iteration_bounds = array<i64: 1, 1, 1>, scalar_prefetch = 0 : i64, scratch_operands = 1 : i64, tpu.core_type = #tpu.core_type<tc>, window_params = [{transform_indices = @transform_0, window_bounds = array<i64: 16, 128>}, {transform_indices = @transform_1, window_bounds = array<i64: 128, 128>}, {transform_indices = @transform_2, window_bounds = array<i64: 1, 128>}, {transform_indices = @transform_3, window_bounds = array<i64: 16, 128>}]} {
    %c0_i32 = arith.constant 0 : i32
    %0 = arith.cmpi eq, %arg2, %c0_i32 : i32
    %1 = arith.extui %0 : i1 to i32
    %c0_i32_0 = arith.constant 0 : i32
    %2 = arith.cmpi ne, %1, %c0_i32_0 : i32
    scf.if %2 {
      %cst_10 = arith.constant 0.000000e+00 : f32
      %12 = vector.broadcast %cst_10 : f32 to vector<16x128xf32>
      %c0_11 = arith.constant 0 : index
      %c0_12 = arith.constant 0 : index
      %13 = vector.load %arg7[%c0_11, %c0_12] : memref<16x128xf32, #tpu.memory_space<vmem>>, vector<16x128xf32>
      tpu.vector_store %arg7[%c0_11, %c0_12], %12 {strides = array<i32>} : memref<16x128xf32, #tpu.memory_space<vmem>>, vector<16x128xf32>,
    } else {
    }
    %c0 = arith.constant 0 : index
    %c0_1 = arith.constant 0 : index
    %3 = vector.load %arg7[%c0, %c0_1] : memref<16x128xf32, #tpu.memory_space<vmem>>, vector<16x128xf32>
    %c0_2 = arith.constant 0 : index
    %c0_3 = arith.constant 0 : index
    %4 = vector.load %arg3[%c0_2, %c0_3] : memref<16x128xbf16, #tpu.memory_space<vmem>>, vector<16x128xbf16>
    %c0_4 = arith.constant 0 : index
    %c0_5 = arith.constant 0 : index
    %5 = vector.load %arg4[%c0_4, %c0_5] : memref<128x128xbf16, #tpu.memory_space<vmem>>, vector<128x128xbf16>
    %cst = arith.constant dense<0.000000e+00> : vector<16x128xf32>
    %6 = tpu.matmul %4, %5, %cst {dimension_numbers = #tpu.dot_dimension_numbers<[1], [0], [0], [1], [0, 0, 1, 1], [], []>} : vector<16x128xbf16>, vector<128x128xbf16>, vector<16x128xf32> -> vector<16x128xf32>
    %7 = arith.addf %3, %6 : vector<16x128xf32>
    %c0_6 = arith.constant 0 : index
    %c0_7 = arith.constant 0 : index
    %8 = vector.load %arg7[%c0_6, %c0_7] : memref<16x128xf32, #tpu.memory_space<vmem>>, vector<16x128xf32>
    tpu.vector_store %arg7[%c0_6, %c0_7], %7 {strides = array<i32>} : memref<16x128xf32, #tpu.memory_space<vmem>>, vector<16x128xf32>,
    %c0_i32_8 = arith.constant 0 : i32
    %9 = arith.cmpi eq, %arg2, %c0_i32_8 : i32
    %10 = arith.extui %9 : i1 to i32
    %c0_i32_9 = arith.constant 0 : i32
    %11 = arith.cmpi ne, %10, %c0_i32_9 : i32
    scf.if %11 {
      %c0_10 = arith.constant 0 : index
      %c0_11 = arith.constant 0 : index
      %12 = vector.load %arg7[%c0_10, %c0_11] : memref<16x128xf32, #tpu.memory_space<vmem>>, vector<16x128xf32>
      %c0_12 = arith.constant 0 : index
      %c0_13 = arith.constant 0 : index
      %13 = vector.load %arg5[%c0_12, %c0_13] : memref<1x128xf32, #tpu.memory_space<vmem>>, vector<1x128xf32>
      %14 = vector.broadcast %13 : vector<1x128xf32> to vector<16x128xf32>
      %15 = arith.addf %12, %14 : vector<16x128xf32>
      %c0_14 = arith.constant 0 : index
      %c0_15 = arith.constant 0 : index
      %16 = vector.load %arg6[%c0_14, %c0_15] : memref<16x128xf32, #tpu.memory_space<vmem>>, vector<16x128xf32>
      tpu.vector_store %arg6[%c0_14, %c0_15], %15 {strides = array<i32>} : memref<16x128xf32, #tpu.memory_space<vmem>>, vector<16x128xf32>,
    } else {
    }
    return
  }
  func.func @transform_0(%arg0: i32, %arg1: i32, %arg2: i32) -> (i32, i32) {
    %c0_i32 = arith.constant 0 : i32
    return %arg0, %arg2 : i32, i32
  }
  func.func @transform_1(%arg0: i32, %arg1: i32, %arg2: i32) -> (i32, i32) {
    %c0_i32 = arith.constant 0 : i32
    return %arg2, %arg1 : i32, i32
  }
  func.func @transform_2(%arg0: i32, %arg1: i32, %arg2: i32) -> (i32, i32) {
    %c0_i32 = arith.constant 0 : i32
    %c0_i32_0 = arith.constant 0 : i32
    return %c0_i32, %arg1 : i32, i32
  }
  func.func @transform_3(%arg0: i32, %arg1: i32, %arg2: i32) -> (i32, i32) {
    %c0_i32 = arith.constant 0 : i32
    return %arg0, %arg1 : i32, i32
  }
}

module attributes {stable_mosaic.version = 11 : i64} {
  func.func @_matmul_kernel(%arg0: i32, %arg1: i32, %arg2: i32, %arg3: memref<16x128xbf16, #tpu.memory_space<vmem>>, %arg4: memref<128x128xbf16, #tpu.memory_space<vmem>>, %arg5: memref<16x128xbf16, #tpu.memory_space<vmem>>, %arg6: memref<16x128xf32, #tpu.memory_space<vmem>>) attributes {dimension_semantics = [#tpu.dimension_semantics<parallel>, #tpu.dimension_semantics<parallel>, #tpu.dimension_semantics<arbitrary>], iteration_bounds = array<i64: 1, 1, 1>, scalar_prefetch = 0 : i64, scratch_operands = 1 : i64, tpu.core_type = #tpu.core_type<tc>, window_params = [{transform_indices = @transform_0, window_bounds = array<i64: 16, 128>}, {transform_indices = @transform_1, window_bounds = array<i64: 128, 128>}, {transform_indices = @transform_2, window_bounds = array<i64: 16, 128>}]} {
    %c0_i32 = arith.constant 0 : i32
    %0 = arith.cmpi eq, %arg2, %c0_i32 : i32
    %1 = arith.extui %0 : i1 to i32
    %c0_i32_0 = arith.constant 0 : i32
    %2 = arith.cmpi ne, %1, %c0_i32_0 : i32
    scf.if %2 {
      %cst_10 = arith.constant 0.000000e+00 : f32
      %12 = vector.broadcast %cst_10 : f32 to vector<16x128xf32>
      %c0_11 = arith.constant 0 : index
      %c0_12 = arith.constant 0 : index
      %13 = vector.load %arg6[%c0_11, %c0_12] : memref<16x128xf32, #tpu.memory_space<vmem>>, vector<16x128xf32>
      tpu.vector_store %arg6[%c0_11, %c0_12], %12 {strides = array<i32>} : memref<16x128xf32, #tpu.memory_space<vmem>>, vector<16x128xf32>,
    } else {
    }
    %c0 = arith.constant 0 : index
    %c0_1 = arith.constant 0 : index
    %3 = vector.load %arg6[%c0, %c0_1] : memref<16x128xf32, #tpu.memory_space<vmem>>, vector<16x128xf32>
    %c0_2 = arith.constant 0 : index
    %c0_3 = arith.constant 0 : index
    %4 = vector.load %arg3[%c0_2, %c0_3] : memref<16x128xbf16, #tpu.memory_space<vmem>>, vector<16x128xbf16>
    %c0_4 = arith.constant 0 : index
    %c0_5 = arith.constant 0 : index
    %5 = vector.load %arg4[%c0_4, %c0_5] : memref<128x128xbf16, #tpu.memory_space<vmem>>, vector<128x128xbf16>
    %cst = arith.constant dense<0.000000e+00> : vector<16x128xf32>
    %6 = tpu.matmul %4, %5, %cst {dimension_numbers = #tpu.dot_dimension_numbers<[1], [0], [0], [1], [0, 0, 1, 1], [], []>} : vector<16x128xbf16>, vector<128x128xbf16>, vector<16x128xf32> -> vector<16x128xf32>
    %7 = arith.addf %3, %6 : vector<16x128xf32>
    %c0_6 = arith.constant 0 : index
    %c0_7 = arith.constant 0 : index
    %8 = vector.load %arg6[%c0_6, %c0_7] : memref<16x128xf32, #tpu.memory_space<vmem>>, vector<16x128xf32>
    tpu.vector_store %arg6[%c0_6, %c0_7], %7 {strides = array<i32>} : memref<16x128xf32, #tpu.memory_space<vmem>>, vector<16x128xf32>,
    %c0_i32_8 = arith.constant 0 : i32
    %9 = arith.cmpi eq, %arg2, %c0_i32_8 : i32
    %10 = arith.extui %9 : i1 to i32
    %c0_i32_9 = arith.constant 0 : i32
    %11 = arith.cmpi ne, %10, %c0_i32_9 : i32
    scf.if %11 {
      %c0_10 = arith.constant 0 : index
      %c0_11 = arith.constant 0 : index
      %12 = vector.load %arg6[%c0_10, %c0_11] : memref<16x128xf32, #tpu.memory_space<vmem>>, vector<16x128xf32>
      %13 = arith.truncf %12 : vector<16x128xf32> to vector<16x128xbf16>
      %c0_12 = arith.constant 0 : index
      %c0_13 = arith.constant 0 : index
      %14 = vector.load %arg5[%c0_12, %c0_13] : memref<16x128xbf16, #tpu.memory_space<vmem>>, vector<16x128xbf16>
      tpu.vector_store %arg5[%c0_12, %c0_13], %13 {strides = array<i32>} : memref<16x128xbf16, #tpu.memory_space<vmem>>, vector<16x128xbf16>,
    } else {
    }
    return
  }
  func.func @transform_0(%arg0: i32, %arg1: i32, %arg2: i32) -> (i32, i32) {
    %c0_i32 = arith.constant 0 : i32
    return %arg0, %arg2 : i32, i32
  }
  func.func @transform_1(%arg0: i32, %arg1: i32, %arg2: i32) -> (i32, i32) {
    %c0_i32 = arith.constant 0 : i32
    return %arg2, %arg1 : i32, i32
  }
  func.func @transform_2(%arg0: i32, %arg1: i32, %arg2: i32) -> (i32, i32) {
    %c0_i32 = arith.constant 0 : i32
    return %arg0, %arg1 : i32, i32
  }
}

module attributes {stable_mosaic.version = 11 : i64} {
  func.func @_attn_kernel(%arg0: i32, %arg1: i32, %arg2: memref<2xi32, #tpu.memory_space<smem>>, %arg3: memref<1x8x32xbf16, #tpu.memory_space<vmem>>, %arg4: memref<1x8x32xbf16, #tpu.memory_space<vmem>>, %arg5: memref<1x8x32xbf16, #tpu.memory_space<vmem>>, %arg6: memref<8x16xf32, #tpu.memory_space<vmem>>, %arg7: memref<8x16xf32, #tpu.memory_space<vmem>>, %arg8: memref<1x8x32xbf16, #tpu.memory_space<vmem>>) attributes {dimension_semantics = [#tpu.dimension_semantics<parallel>, #tpu.dimension_semantics<parallel>], iteration_bounds = array<i64: 2, 1>, scalar_prefetch = 1 : i64, scratch_operands = 0 : i64, tpu.core_type = #tpu.core_type<tc>, window_params = [{transform_indices = @transform_0, window_bounds = array<i64: 1, 8, 32>}, {transform_indices = @transform_1, window_bounds = array<i64: 1, 8, 32>}, {transform_indices = @transform_2, window_bounds = array<i64: 1, 8, 32>}, {pipeline_mode = #tpu.pipeline_mode<synchronous>, transform_indices = @transform_3, window_bounds = array<i64: 8, 16>}, {pipeline_mode = #tpu.pipeline_mode<synchronous>, transform_indices = @transform_4, window_bounds = array<i64: 8, 16>}, {transform_indices = @transform_5, window_bounds = array<i64: 1, 8, 32>}]} {
    %0 = tpu.iota {dimensions = array<i32: 1>} : vector<1x8xi32>
    %1 = arith.index_cast %arg0 : i32 to index
    %2 = memref.load %arg2[%1] : memref<2xi32, #tpu.memory_space<smem>>
    %3 = vector.broadcast %2 : i32 to vector<1x8xi32>
    %4 = arith.cmpi slt, %0, %3 : vector<1x8xi32>
    %c8_i32 = arith.constant 8 : i32
    %5 = arith.muli %arg1, %c8_i32 : i32
    %6 = tpu.assume_multiple %5, 8 : i32
    %7 = arith.index_cast %6 : i32 to index
    %c0 = arith.constant 0 : index
    %8 = vector.load %arg6[%7, %c0] : memref<8x16xf32, #tpu.memory_space<vmem>>, vector<8x16xf32>
    %9 = arith.index_cast %6 : i32 to index
    %c0_0 = arith.constant 0 : index
    %10 = vector.load %arg7[%9, %c0_0] : memref<8x16xf32, #tpu.memory_space<vmem>>, vector<8x16xf32>
    %c0_1 = arith.constant 0 : index
    %c0_2 = arith.constant 0 : index
    %11 = vector.load %arg6[%c0_1, %c0_2] : memref<8x16xf32, #tpu.memory_space<vmem>>, vector<8x16xf32>
    %c0_3 = arith.constant 0 : index
    %c0_4 = arith.constant 0 : index
    %12 = vector.load %arg7[%c0_3, %c0_4] : memref<8x16xf32, #tpu.memory_space<vmem>>, vector<8x16xf32>
    %c0_5 = arith.constant 0 : index
    %c0_6 = arith.constant 0 : index
    %c0_7 = arith.constant 0 : index
    %13 = vector.load %arg3[%c0_5, %c0_6, %c0_7] : memref<1x8x32xbf16, #tpu.memory_space<vmem>>, vector<1x8x32xbf16>
    %14 = vector.shape_cast %13 : vector<1x8x32xbf16> to vector<8x32xbf16>
    %15 = arith.extf %14 : vector<8x32xbf16> to vector<8x32xf32>
    %c0_8 = arith.constant 0 : index
    %c0_9 = arith.constant 0 : index
    %c0_10 = arith.constant 0 : index
    %16 = vector.load %arg4[%c0_8, %c0_9, %c0_10] : memref<1x8x32xbf16, #tpu.memory_space<vmem>>, vector<1x8x32xbf16>
    %17 = vector.shape_cast %16 : vector<1x8x32xbf16> to vector<8x32xbf16>
    %18 = arith.extf %17 : vector<8x32xbf16> to vector<8x32xf32>
    %c0_11 = arith.constant 0 : index
    %c0_12 = arith.constant 0 : index
    %c0_13 = arith.constant 0 : index
    %19 = vector.load %arg5[%c0_11, %c0_12, %c0_13] : memref<1x8x32xbf16, #tpu.memory_space<vmem>>, vector<1x8x32xbf16>
    %20 = vector.shape_cast %19 : vector<1x8x32xbf16> to vector<8x32xbf16>
    %21 = vector.extract_strided_slice %15 {offsets = [0, 0], sizes = [8, 16], strides = [1, 1]} : vector<8x32xf32> to vector<8x16xf32>
    %22 = vector.extract_strided_slice %21 {offsets = [0, 0], sizes = [8, 8], strides = [1, 1]} : vector<8x16xf32> to vector<8x8xf32>
    %23 = vector.extract_strided_slice %21 {offsets = [0, 8], sizes = [8, 8], strides = [1, 1]} : vector<8x16xf32> to vector<8x8xf32>
    %cst = arith.constant 0.000000e+00 : f32
    %24 = vector.broadcast %cst : f32 to vector<8x8xf32>
    %25 = arith.subf %24, %23 : vector<8x8xf32>
    %26 = tpu.concatenate %25, %22 in 1 : vector<8x8xf32>, vector<8x8xf32> -> vector<8x16xf32>
    %27 = arith.mulf %21, %8 : vector<8x16xf32>
    %28 = arith.mulf %26, %10 : vector<8x16xf32>
    %29 = arith.addf %27, %28 : vector<8x16xf32>
    %30 = vector.extract_strided_slice %18 {offsets = [0, 0], sizes = [8, 16], strides = [1, 1]} : vector<8x32xf32> to vector<8x16xf32>
    %31 = vector.extract_strided_slice %30 {offsets = [0, 0], sizes = [8, 8], strides = [1, 1]} : vector<8x16xf32> to vector<8x8xf32>
    %32 = vector.extract_strided_slice %30 {offsets = [0, 8], sizes = [8, 8], strides = [1, 1]} : vector<8x16xf32> to vector<8x8xf32>
    %cst_14 = arith.constant 0.000000e+00 : f32
    %33 = vector.broadcast %cst_14 : f32 to vector<8x8xf32>
    %34 = arith.subf %33, %32 : vector<8x8xf32>
    %35 = tpu.concatenate %34, %31 in 1 : vector<8x8xf32>, vector<8x8xf32> -> vector<8x16xf32>
    %36 = arith.mulf %30, %11 : vector<8x16xf32>
    %37 = arith.mulf %35, %12 : vector<8x16xf32>
    %38 = arith.addf %36, %37 : vector<8x16xf32>
    %cst_15 = arith.constant dense<0.000000e+00> : vector<8x8xf32>
    %39 = tpu.matmul %29, %38, %cst_15 {dimension_numbers = #tpu.dot_dimension_numbers<[1], [1], [0], [0], [0, 0, 1, 0], [], []>} : vector<8x16xf32>, vector<8x16xf32>, vector<8x8xf32> -> vector<8x8xf32>
    %cst_16 = arith.constant 2.500000e-01 : f32
    %40 = vector.broadcast %cst_16 : f32 to vector<8x8xf32>
    %41 = arith.mulf %39, %40 : vector<8x8xf32>
    %cst_17 = arith.constant -1.000000e+30 : f32
    %42 = vector.shape_cast %4 : vector<1x8xi1> to vector<1x8xi1>
    %43 = vector.broadcast %42 : vector<1x8xi1> to vector<8x8xi1>
    %44 = vector.broadcast %cst_17 : f32 to vector<8x8xf32>
    %45 = arith.select %43, %41, %44 : vector<8x8xi1>, vector<8x8xf32>
    %cst_18 = arith.constant dense<0xFF800000> : vector<8xf32>
    %46 = vector.multi_reduction <maximumf>, %45, %cst_18 [1] : vector<8x8xf32> to vector<8xf32>
    %47 = vector.shape_cast %46 : vector<8xf32> to vector<8x1xf32>
    %48 = vector.broadcast %47 : vector<8x1xf32> to vector<8x8xf32>
    %49 = arith.subf %45, %48 : vector<8x8xf32>
    %50 = math.exp %49 : vector<8x8xf32>
    %cst_19 = arith.constant dense<0.000000e+00> : vector<8xf32>
    %51 = vector.multi_reduction <add>, %50, %cst_19 [1] : vector<8x8xf32> to vector<8xf32>
    %52 = vector.shape_cast %51 : vector<8xf32> to vector<8x1xf32>
    %53 = tpu.reciprocal %52 {approx = true} : vector<8x1xf32> -> vector<8x1xf32>
    %54 = vector.broadcast %53 : vector<8x1xf32> to vector<8x8xf32>
    %55 = arith.mulf %50, %54 : vector<8x8xf32>
    %56 = arith.truncf %55 : vector<8x8xf32> to vector<8x8xbf16>
    %57 = vector.extract_strided_slice %20 {offsets = [0, 0], sizes = [8, 16], strides = [1, 1]} : vector<8x32xbf16> to vector<8x16xbf16>
    %cst_20 = arith.constant dense<0.000000e+00> : vector<8x16xf32>
    %58 = tpu.matmul %56, %57, %cst_20 {dimension_numbers = #tpu.dot_dimension_numbers<[1], [0], [0], [1], [0, 0, 1, 1], [], []>} : vector<8x8xbf16>, vector<8x16xbf16>, vector<8x16xf32> -> vector<8x16xf32>
    %59 = vector.extract_strided_slice %15 {offsets = [0, 16], sizes = [8, 16], strides = [1, 1]} : vector<8x32xf32> to vector<8x16xf32>
    %60 = vector.extract_strided_slice %59 {offsets = [0, 0], sizes = [8, 8], strides = [1, 1]} : vector<8x16xf32> to vector<8x8xf32>
    %61 = vector.extract_strided_slice %59 {offsets = [0, 8], sizes = [8, 8], strides = [1, 1]} : vector<8x16xf32> to vector<8x8xf32>
    %cst_21 = arith.constant 0.000000e+00 : f32
    %62 = vector.broadcast %cst_21 : f32 to vector<8x8xf32>
    %63 = arith.subf %62, %61 : vector<8x8xf32>
    %64 = tpu.concatenate %63, %60 in 1 : vector<8x8xf32>, vector<8x8xf32> -> vector<8x16xf32>
    %65 = arith.mulf %59, %8 : vector<8x16xf32>
    %66 = arith.mulf %64, %10 : vector<8x16xf32>
    %67 = arith.addf %65, %66 : vector<8x16xf32>
    %68 = vector.extract_strided_slice %18 {offsets = [0, 16], sizes = [8, 16], strides = [1, 1]} : vector<8x32xf32> to vector<8x16xf32>
    %69 = vector.extract_strided_slice %68 {offsets = [0, 0], sizes = [8, 8], strides = [1, 1]} : vector<8x16xf32> to vector<8x8xf32>
    %70 = vector.extract_strided_slice %68 {offsets = [0, 8], sizes = [8, 8], strides = [1, 1]} : vector<8x16xf32> to vector<8x8xf32>
    %cst_22 = arith.constant 0.000000e+00 : f32
    %71 = vector.broadcast %cst_22 : f32 to vector<8x8xf32>
    %72 = arith.subf %71, %70 : vector<8x8xf32>
    %73 = tpu.concatenate %72, %69 in 1 : vector<8x8xf32>, vector<8x8xf32> -> vector<8x16xf32>
    %74 = arith.mulf %68, %11 : vector<8x16xf32>
    %75 = arith.mulf %73, %12 : vector<8x16xf32>
    %76 = arith.addf %74, %75 : vector<8x16xf32>
    %cst_23 = arith.constant dense<0.000000e+00> : vector<8x8xf32>
    %77 = tpu.matmul %67, %76, %cst_23 {dimension_numbers = #tpu.dot_dimension_numbers<[1], [1], [0], [0], [0, 0, 1, 0], [], []>} : vector<8x16xf32>, vector<8x16xf32>, vector<8x8xf32> -> vector<8x8xf32>
    %cst_24 = arith.constant 2.500000e-01 : f32
    %78 = vector.broadcast %cst_24 : f32 to vector<8x8xf32>
    %79 = arith.mulf %77, %78 : vector<8x8xf32>
    %cst_25 = arith.constant -1.000000e+30 : f32
    %80 = vector.shape_cast %4 : vector<1x8xi1> to vector<1x8xi1>
    %81 = vector.broadcast %80 : vector<1x8xi1> to vector<8x8xi1>
    %82 = vector.broadcast %cst_25 : f32 to vector<8x8xf32>
    %83 = arith.select %81, %79, %82 : vector<8x8xi1>, vector<8x8xf32>
    %cst_26 = arith.constant dense<0xFF800000> : vector<8xf32>
    %84 = vector.multi_reduction <maximumf>, %83, %cst_26 [1] : vector<8x8xf32> to vector<8xf32>
    %85 = vector.shape_cast %84 : vector<8xf32> to vector<8x1xf32>
    %86 = vector.broadcast %85 : vector<8x1xf32> to vector<8x8xf32>
    %87 = arith.subf %83, %86 : vector<8x8xf32>
    %88 = math.exp %87 : vector<8x8xf32>
    %cst_27 = arith.constant dense<0.000000e+00> : vector<8xf32>
    %89 = vector.multi_reduction <add>, %88, %cst_27 [1] : vector<8x8xf32> to vector<8xf32>
    %90 = vector.shape_cast %89 : vector<8xf32> to vector<8x1xf32>
    %91 = tpu.reciprocal %90 {approx = true} : vector<8x1xf32> -> vector<8x1xf32>
    %92 = vector.broadcast %91 : vector<8x1xf32> to vector<8x8xf32>
    %93 = arith.mulf %88, %92 : vector<8x8xf32>
    %94 = arith.truncf %93 : vector<8x8xf32> to vector<8x8xbf16>
    %95 = vector.extract_strided_slice %20 {offsets = [0, 16], sizes = [8, 16], strides = [1, 1]} : vector<8x32xbf16> to vector<8x16xbf16>
    %cst_28 = arith.constant dense<0.000000e+00> : vector<8x16xf32>
    %96 = tpu.matmul %94, %95, %cst_28 {dimension_numbers = #tpu.dot_dimension_numbers<[1], [0], [0], [1], [0, 0, 1, 1], [], []>} : vector<8x8xbf16>, vector<8x16xbf16>, vector<8x16xf32> -> vector<8x16xf32>
    %97 = tpu.concatenate %58, %96 in 1 : vector<8x16xf32>, vector<8x16xf32> -> vector<8x32xf32>
    %98 = arith.truncf %97 : vector<8x32xf32> to vector<8x32xbf16>
    %c0_29 = arith.constant 0 : index
    %c0_30 = arith.constant 0 : index
    %c0_31 = arith.constant 0 : index
    %99 = vector.load %arg8[%c0_29, %c0_30, %c0_31] : memref<1x8x32xbf16, #tpu.memory_space<vmem>>, vector<1x8x32xbf16>
    %100 = vector.shape_cast %99 : vector<1x8x32xbf16> to vector<8x32xbf16>
    %101 = vector.shape_cast %98 : vector<8x32xbf16> to vector<1x8x32xbf16>
    tpu.vector_store %arg8[%c0_29, %c0_30, %c0_31], %101 {strides = array<i32>} : memref<1x8x32xbf16, #tpu.memory_space<vmem>>, vector<1x8x32xbf16>,
    return
  }
  func.func @transform_0(%arg0: i32, %arg1: i32, %arg2: memref<2xi32, #tpu.memory_space<smem>>) -> (i32, i32, i32) {
    %c0_i32 = arith.constant 0 : i32
    %c0_i32_0 = arith.constant 0 : i32
    return %arg0, %arg1, %c0_i32 : i32, i32, i32
  }
  func.func @transform_1(%arg0: i32, %arg1: i32, %arg2: memref<2xi32, #tpu.memory_space<smem>>) -> (i32, i32, i32) {
    %c0_i32 = arith.constant 0 : i32
    %c0_i32_0 = arith.constant 0 : i32
    %c0_i32_1 = arith.constant 0 : i32
    return %arg0, %c0_i32, %c0_i32_0 : i32, i32, i32
  }
  func.func @transform_2(%arg0: i32, %arg1: i32, %arg2: memref<2xi32, #tpu.memory_space<smem>>) -> (i32, i32, i32) {
    %c0_i32 = arith.constant 0 : i32
    %c0_i32_0 = arith.constant 0 : i32
    %c0_i32_1 = arith.constant 0 : i32
    return %arg0, %c0_i32, %c0_i32_0 : i32, i32, i32
  }
  func.func @transform_3(%arg0: i32, %arg1: i32, %arg2: memref<2xi32, #tpu.memory_space<smem>>) -> (i32, i32) {
    %c0_i32 = arith.constant 0 : i32
    %c0_i32_0 = arith.constant 0 : i32
    %c0_i32_1 = arith.constant 0 : i32
    return %c0_i32, %c0_i32_0 : i32, i32
  }
  func.func @transform_4(%arg0: i32, %arg1: i32, %arg2: memref<2xi32, #tpu.memory_space<smem>>) -> (i32, i32) {
    %c0_i32 = arith.constant 0 : i32
    %c0_i32_0 = arith.constant 0 : i32
    %c0_i32_1 = arith.constant 0 : i32
    return %c0_i32, %c0_i32_0 : i32, i32
  }
  func.func @transform_5(%arg0: i32, %arg1: i32, %arg2: memref<2xi32, #tpu.memory_space<smem>>) -> (i32, i32, i32) {
    %c0_i32 = arith.constant 0 : i32
    %c0_i32_0 = arith.constant 0 : i32
    return %arg0, %arg1, %c0_i32 : i32, i32, i32
  }
}

module attributes {stable_mosaic.version = 11 : i64} {
  func.func @_ffn_kernel(%arg0: i32, %arg1: i32, %arg2: memref<16x32xbf16, #tpu.memory_space<vmem>>, %arg3: memref<32x256xbf16, #tpu.memory_space<vmem>>, %arg4: memref<32x256xbf16, #tpu.memory_space<vmem>>, %arg5: memref<256x32xbf16, #tpu.memory_space<vmem>>, %arg6: memref<16x32xbf16, #tpu.memory_space<vmem>>, %arg7: memref<16x32xf32, #tpu.memory_space<vmem>>) attributes {dimension_semantics = [#tpu.dimension_semantics<parallel>, #tpu.dimension_semantics<arbitrary>], iteration_bounds = array<i64: 1, 1>, scalar_prefetch = 0 : i64, scratch_operands = 1 : i64, tpu.core_type = #tpu.core_type<tc>, window_params = [{transform_indices = @transform_0, window_bounds = array<i64: 16, 32>}, {transform_indices = @transform_1, window_bounds = array<i64: 32, 256>}, {transform_indices = @transform_2, window_bounds = array<i64: 32, 256>}, {transform_indices = @transform_3, window_bounds = array<i64: 256, 32>}, {transform_indices = @transform_4, window_bounds = array<i64: 16, 32>}]} {
    %c0_i32 = arith.constant 0 : i32
    %0 = arith.cmpi eq, %arg1, %c0_i32 : i32
    %1 = arith.extui %0 : i1 to i32
    %c0_i32_0 = arith.constant 0 : i32
    %2 = arith.cmpi ne, %1, %c0_i32_0 : i32
    scf.if %2 {
      %cst_17 = arith.constant 0.000000e+00 : f32
      %24 = vector.broadcast %cst_17 : f32 to vector<16x32xf32>
      %c0_18 = arith.constant 0 : index
      %c0_19 = arith.constant 0 : index
      %25 = vector.load %arg7[%c0_18, %c0_19] : memref<16x32xf32, #tpu.memory_space<vmem>>, vector<16x32xf32>
      tpu.vector_store %arg7[%c0_18, %c0_19], %24 {strides = array<i32>} : memref<16x32xf32, #tpu.memory_space<vmem>>, vector<16x32xf32>,
    } else {
    }
    %c0 = arith.constant 0 : index
    %c0_1 = arith.constant 0 : index
    %3 = vector.load %arg2[%c0, %c0_1] : memref<16x32xbf16, #tpu.memory_space<vmem>>, vector<16x32xbf16>
    %c0_2 = arith.constant 0 : index
    %c0_3 = arith.constant 0 : index
    %4 = vector.load %arg3[%c0_2, %c0_3] : memref<32x256xbf16, #tpu.memory_space<vmem>>, vector<32x256xbf16>
    %cst = arith.constant dense<0.000000e+00> : vector<16x256xf32>
    %5 = tpu.matmul %3, %4, %cst {dimension_numbers = #tpu.dot_dimension_numbers<[1], [0], [0], [1], [0, 0, 1, 1], [], []>} : vector<16x32xbf16>, vector<32x256xbf16>, vector<16x256xf32> -> vector<16x256xf32>
    %c0_4 = arith.constant 0 : index
    %c0_5 = arith.constant 0 : index
    %6 = vector.load %arg4[%c0_4, %c0_5] : memref<32x256xbf16, #tpu.memory_space<vmem>>, vector<32x256xbf16>
    %cst_6 = arith.constant dense<0.000000e+00> : vector<16x256xf32>
    %7 = tpu.matmul %3, %6, %cst_6 {dimension_numbers = #tpu.dot_dimension_numbers<[1], [0], [0], [1], [0, 0, 1, 1], [], []>} : vector<16x32xbf16>, vector<32x256xbf16>, vector<16x256xf32> -> vector<16x256xf32>
    %8 = arith.negf %5 : vector<16x256xf32>
    %9 = math.exp %8 : vector<16x256xf32>
    %cst_7 = arith.constant 1.000000e+00 : f32
    %10 = vector.broadcast %cst_7 : f32 to vector<16x256xf32>
    %11 = arith.addf %10, %9 : vector<16x256xf32>
    %12 = arith.divf %10, %11 : vector<16x256xf32>
    %13 = arith.mulf %5, %12 : vector<16x256xf32>
    %14 = arith.mulf %13, %7 : vector<16x256xf32>
    %c0_8 = arith.constant 0 : index
    %c0_9 = arith.constant 0 : index
    %15 = vector.load %arg7[%c0_8, %c0_9] : memref<16x32xf32, #tpu.memory_space<vmem>>, vector<16x32xf32>
    %16 = arith.truncf %14 : vector<16x256xf32> to vector<16x256xbf16>
    %c0_10 = arith.constant 0 : index
    %c0_11 = arith.constant 0 : index
    %17 = vector.load %arg5[%c0_10, %c0_11] : memref<256x32xbf16, #tpu.memory_space<vmem>>, vector<256x32xbf16>
    %cst_12 = arith.constant dense<0.000000e+00> : vector<16x32xf32>
    %18 = tpu.matmul %16, %17, %cst_12 {dimension_numbers = #tpu.dot_dimension_numbers<[1], [0], [0], [1], [0, 0, 1, 1], [], []>} : vector<16x256xbf16>, vector<256x32xbf16>, vector<16x32xf32> -> vector<16x32xf32>
    %19 = arith.addf %15, %18 : vector<16x32xf32>
    %c0_13 = arith.constant 0 : index
    %c0_14 = arith.constant 0 : index
    %20 = vector.load %arg7[%c0_13, %c0_14] : memref<16x32xf32, #tpu.memory_space<vmem>>, vector<16x32xf32>
    tpu.vector_store %arg7[%c0_13, %c0_14], %19 {strides = array<i32>} : memref<16x32xf32, #tpu.memory_space<vmem>>, vector<16x32xf32>,
    %c0_i32_15 = arith.constant 0 : i32
    %21 = arith.cmpi eq, %arg1, %c0_i32_15 : i32
    %22 = arith.extui %21 : i1 to i32
    %c0_i32_16 = arith.constant 0 : i32
    %23 = arith.cmpi ne, %22, %c0_i32_16 : i32
    scf.if %23 {
      %c0_17 = arith.constant 0 : index
      %c0_18 = arith.constant 0 : index
      %24 = vector.load %arg7[%c0_17, %c0_18] : memref<16x32xf32, #tpu.memory_space<vmem>>, vector<16x32xf32>
      %25 = arith.truncf %24 : vector<16x32xf32> to vector<16x32xbf16>
      %c0_19 = arith.constant 0 : index
      %c0_20 = arith.constant 0 : index
      %26 = vector.load %arg6[%c0_19, %c0_20] : memref<16x32xbf16, #tpu.memory_space<vmem>>, vector<16x32xbf16>
      tpu.vector_store %arg6[%c0_19, %c0_20], %25 {strides = array<i32>} : memref<16x32xbf16, #tpu.memory_space<vmem>>, vector<16x32xbf16>,
    } else {
    }
    return
  }
  func.func @transform_0(%arg0: i32, %arg1: i32) -> (i32, i32) {
    %c0_i32 = arith.constant 0 : i32
    %c0_i32_0 = arith.constant 0 : i32
    return %arg0, %c0_i32 : i32, i32
  }
  func.func @transform_1(%arg0: i32, %arg1: i32) -> (i32, i32) {
    %c0_i32 = arith.constant 0 : i32
    %c0_i32_0 = arith.constant 0 : i32
    return %c0_i32, %arg1 : i32, i32
  }
  func.func @transform_2(%arg0: i32, %arg1: i32) -> (i32, i32) {
    %c0_i32 = arith.constant 0 : i32
    %c0_i32_0 = arith.constant 0 : i32
    return %c0_i32, %arg1 : i32, i32
  }
  func.func @transform_3(%arg0: i32, %arg1: i32) -> (i32, i32) {
    %c0_i32 = arith.constant 0 : i32
    %c0_i32_0 = arith.constant 0 : i32
    return %arg1, %c0_i32 : i32, i32
  }
  func.func @transform_4(%arg0: i32, %arg1: i32) -> (i32, i32) {
    %c0_i32 = arith.constant 0 : i32
    %c0_i32_0 = arith.constant 0 : i32
    return %arg0, %c0_i32 : i32, i32
  }
}

module attributes {stable_mosaic.version = 11 : i64} {
  func.func @_matmul_bias_kernel(%arg0: i32, %arg1: i32, %arg2: i32, %arg3: memref<16x128xbf16, #tpu.memory_space<vmem>>, %arg4: memref<128x128xbf16, #tpu.memory_space<vmem>>, %arg5: memref<1x128xf32, #tpu.memory_space<vmem>>, %arg6: memref<16x128xbf16, #tpu.memory_space<vmem>>, %arg7: memref<16x128xf32, #tpu.memory_space<vmem>>) attributes {dimension_semantics = [#tpu.dimension_semantics<parallel>, #tpu.dimension_semantics<parallel>, #tpu.dimension_semantics<arbitrary>], iteration_bounds = array<i64: 1, 1, 1>, scalar_prefetch = 0 : i64, scratch_operands = 1 : i64, tpu.core_type = #tpu.core_type<tc>, window_params = [{transform_indices = @transform_0, window_bounds = array<i64: 16, 128>}, {transform_indices = @transform_1, window_bounds = array<i64: 128, 128>}, {transform_indices = @transform_2, window_bounds = array<i64: 1, 128>}, {transform_indices = @transform_3, window_bounds = array<i64: 16, 128>}]} {
    %c0_i32 = arith.constant 0 : i32
    %0 = arith.cmpi eq, %arg2, %c0_i32 : i32
    %1 = arith.extui %0 : i1 to i32
    %c0_i32_0 = arith.constant 0 : i32
    %2 = arith.cmpi ne, %1, %c0_i32_0 : i32
    scf.if %2 {
      %cst_10 = arith.constant 0.000000e+00 : f32
      %12 = vector.broadcast %cst_10 : f32 to vector<16x128xf32>
      %c0_11 = arith.constant 0 : index
      %c0_12 = arith.constant 0 : index
      %13 = vector.load %arg7[%c0_11, %c0_12] : memref<16x128xf32, #tpu.memory_space<vmem>>, vector<16x128xf32>
      tpu.vector_store %arg7[%c0_11, %c0_12], %12 {strides = array<i32>} : memref<16x128xf32, #tpu.memory_space<vmem>>, vector<16x128xf32>,
    } else {
    }
    %c0 = arith.constant 0 : index
    %c0_1 = arith.constant 0 : index
    %3 = vector.load %arg7[%c0, %c0_1] : memref<16x128xf32, #tpu.memory_space<vmem>>, vector<16x128xf32>
    %c0_2 = arith.constant 0 : index
    %c0_3 = arith.constant 0 : index
    %4 = vector.load %arg3[%c0_2, %c0_3] : memref<16x128xbf16, #tpu.memory_space<vmem>>, vector<16x128xbf16>
    %c0_4 = arith.constant 0 : index
    %c0_5 = arith.constant 0 : index
    %5 = vector.load %arg4[%c0_4, %c0_5] : memref<128x128xbf16, #tpu.memory_space<vmem>>, vector<128x128xbf16>
    %cst = arith.constant dense<0.000000e+00> : vector<16x128xf32>
    %6 = tpu.matmul %4, %5, %cst {dimension_numbers = #tpu.dot_dimension_numbers<[1], [0], [0], [1], [0, 0, 1, 1], [], []>} : vector<16x128xbf16>, vector<128x128xbf16>, vector<16x128xf32> -> vector<16x128xf32>
    %7 = arith.addf %3, %6 : vector<16x128xf32>
    %c0_6 = arith.constant 0 : index
    %c0_7 = arith.constant 0 : index
    %8 = vector.load %arg7[%c0_6, %c0_7] : memref<16x128xf32, #tpu.memory_space<vmem>>, vector<16x128xf32>
    tpu.vector_store %arg7[%c0_6, %c0_7], %7 {strides = array<i32>} : memref<16x128xf32, #tpu.memory_space<vmem>>, vector<16x128xf32>,
    %c0_i32_8 = arith.constant 0 : i32
    %9 = arith.cmpi eq, %arg2, %c0_i32_8 : i32
    %10 = arith.extui %9 : i1 to i32
    %c0_i32_9 = arith.constant 0 : i32
    %11 = arith.cmpi ne, %10, %c0_i32_9 : i32
    scf.if %11 {
      %c0_10 = arith.constant 0 : index
      %c0_11 = arith.constant 0 : index
      %12 = vector.load %arg7[%c0_10, %c0_11] : memref<16x128xf32, #tpu.memory_space<vmem>>, vector<16x128xf32>
      %c0_12 = arith.constant 0 : index
      %c0_13 = arith.constant 0 : index
      %13 = vector.load %arg5[%c0_12, %c0_13] : memref<1x128xf32, #tpu.memory_space<vmem>>, vector<1x128xf32>
      %14 = vector.broadcast %13 : vector<1x128xf32> to vector<16x128xf32>
      %15 = arith.addf %12, %14 : vector<16x128xf32>
      %16 = arith.negf %15 : vector<16x128xf32>
      %17 = math.exp %16 : vector<16x128xf32>
      %cst_14 = arith.constant 1.000000e+00 : f32
      %18 = vector.broadcast %cst_14 : f32 to vector<16x128xf32>
      %19 = arith.addf %18, %17 : vector<16x128xf32>
      %20 = arith.divf %18, %19 : vector<16x128xf32>
      %21 = arith.mulf %15, %20 : vector<16x128xf32>
      %22 = arith.truncf %21 : vector<16x128xf32> to vector<16x128xbf16>
      %c0_15 = arith.constant 0 : index
      %c0_16 = arith.constant 0 : index
      %23 = vector.load %arg6[%c0_15, %c0_16] : memref<16x128xbf16, #tpu.memory_space<vmem>>, vector<16x128xbf16>
      tpu.vector_store %arg6[%c0_15, %c0_16], %22 {strides = array<i32>} : memref<16x128xbf16, #tpu.memory_space<vmem>>, vector<16x128xbf16>,
    } else {
    }
    return
  }
  func.func @transform_0(%arg0: i32, %arg1: i32, %arg2: i32) -> (i32, i32) {
    %c0_i32 = arith.constant 0 : i32
    return %arg0, %arg2 : i32, i32
  }
  func.func @transform_1(%arg0: i32, %arg1: i32, %arg2: i32) -> (i32, i32) {
    %c0_i32 = arith.constant 0 : i32
    return %arg2, %arg1 : i32, i32
  }
  func.func @transform_2(%arg0: i32, %arg1: i32, %arg2: i32) -> (i32, i32) {
    %c0_i32 = arith.constant 0 : i32
    %c0_i32_0 = arith.constant 0 : i32
    return %c0_i32, %arg1 : i32, i32
  }
  func.func @transform_3(%arg0: i32, %arg1: i32, %arg2: i32) -> (i32, i32) {
    %c0_i32 = arith.constant 0 : i32
    return %arg0, %arg1 : i32, i32
  }
}

</mosaic_0001>

<bundles_post_ra>
// kernel: dit_forward.12
= control target key start
LH: loop header
LB: loop body
LE: loop exit
PB: predicated region body
PF: predicated region fallthrough
CT: control target
= control target key end

     0   :  { %v227_v0 = vmov 0.0   ;;  %vm228_vm0 = vmmov 0   ;;  %s282_s1 = inlined_call_operand.vmem [shape: bf16[128,128], index: 1, kind: input, shape index: {}]   ;;  %s283_s0 = inlined_call_operand.vmem [shape: bf16[16,128], index: 0, kind: input, shape index: {}]   ;;  %s284_s2 = inlined_call_operand.vmem [shape: f32[1,128], index: 2, kind: input, shape index: {}]   ;;  %s285_s3 = inlined_call_operand.vmem [shape: bf16[16,128], index: 3, kind: output, shape index: {}]  }
   0x1   :  { %196 = vmatprep.subr.bf16.mxu0 %v227_v0  ;;  %v218_v1 = vld [vmem:[%s282_s1] sm:$0xff]   ;;  %212 = vmatprep.mubr.msk.bf16.mxu0 %vm228_vm0, %v227_v0  ;;  %v219_v2 = vld [vmem:[%s282_s1 + $0x8] sm:$0xff]   ;;  %v220_v3 = vld [vmem:[%s282_s1 + $0x10] sm:$0xff]  }
   0x2   :  { %197 = vmatpush3.bf16.msra.mxu0 %v218_v1  ;;  %v221_v4 = vld [vmem:[%s282_s1 + $0x18] sm:$0xff]   ;;  %v222_v5 = vld [vmem:[%s282_s1 + $0x20] sm:$0xff]   ;;  %v223_v6 = vld [vmem:[%s282_s1 + $0x28] sm:$0xff]  }
   0x3   :  { %198 = vmatprep.subr.bf16.mxu0 %v227_v0  ;;  %v224_v7 = vld [vmem:[%s282_s1 + $0x30] sm:$0xff]   ;;  %v225_v8 = vld [vmem:[%s282_s1 + $0x38] sm:$0xff]   ;;  %v226_v9 = vld [vmem:[%s283_s0] sm:$0xff]  }
   0x4   :  { %v177_v11 = vld [vmem:[%s284_s2] ss:$0 sm:$0xff] }
   0x6   :  { %199 = vmatpush3.bf16.msra.mxu0 %v219_v2 }
   0x7   :  { %200 = vmatprep.subr.bf16.mxu0 %v227_v0 }
   0xa   :  { %201 = vmatpush3.bf16.msra.mxu0 %v220_v3 }
   0xb   :  { %202 = vmatprep.subr.bf16.mxu0 %v227_v0 }
   0xe   :  { %203 = vmatpush3.bf16.msra.mxu0 %v221_v4 }
   0xf   :  { %204 = vmatprep.subr.bf16.mxu0 %v227_v0 }
  0x12   :  { %205 = vmatpush3.bf16.msra.mxu0 %v222_v5 }
  0x13   :  { %206 = vmatprep.subr.bf16.mxu0 %v227_v0 }
  0x16   :  { %207 = vmatpush3.bf16.msra.mxu0 %v223_v6 }
  0x17   :  { %208 = vmatprep.subr.bf16.mxu0 %v227_v0 }
  0x1a   :  { %209 = vmatpush3.bf16.msra.mxu0 %v224_v7 }
  0x1b   :  { %210 = vmatprep.subr.bf16.mxu0 %v227_v0 }
  0x1e   :  { %211 = vmatpush3.bf16.msra.mxu0 %v225_v8 }
  0x21   :  { %213 = vmatmul.mubr.bf16.vlgmr.msra.gmra.mrb[0].mxu0 %v226_v9 }
  0xf4   :  { %v129_v10 = vpop.f32.mrb[0].mxu0 }
  0xf5   :  { %v214_v12 = vpop.f32.mrb[1].mxu0  ;;  %v152_v14 = vadd.f32 %v177_v11, %v129_v10 }
  0xf6   :  { %v132_v13 = vpop.f32.mrb[2].mxu0 }
  0xf7   :  { %v153_v15 = vadd.f32 %v177_v11, %v132_v13  ;;  %v215_v16 = vpop.f32.mrb[3].mxu0 }
  0xf9   :  { %v185_v17 = vpack.c.bf16 %v153_v15, %v152_v14 }
  0xfb   :  { %186 = vst [vmem:[%s285_s3] sm:$0xff] %v185_v17  }

// kernel: dit_forward.14
= control target key start
LH: loop header
LB: loop body
LE: loop exit
PB: predicated region body
PF: predicated region fallthrough
CT: control target
= control target key end

     0   :  { %v214_v0 = vmov 0.0   ;;  %vm215_vm0 = vmmov 0   ;;  %s261_s1 = inlined_call_operand.vmem [shape: bf16[128,128], index: 1, kind: input, shape index: {}]   ;;  %s262_s0 = inlined_call_operand.vmem [shape: bf16[16,128], index: 0, kind: input, shape index: {}]   ;;  %s263_s2 = inlined_call_operand.vmem [shape: bf16[16,128], index: 2, kind: output, shape index: {}]  }
   0x1   :  { %183 = vmatprep.subr.bf16.mxu0 %v214_v0  ;;  %v205_v1 = vld [vmem:[%s261_s1] sm:$0xff]   ;;  %199 = vmatprep.mubr.msk.bf16.mxu0 %vm215_vm0, %v214_v0  ;;  %v206_v2 = vld [vmem:[%s261_s1 + $0x8] sm:$0xff]   ;;  %v207_v3 = vld [vmem:[%s261_s1 + $0x10] sm:$0xff]  }
   0x2   :  { %184 = vmatpush3.bf16.msra.mxu0 %v205_v1  ;;  %v208_v4 = vld [vmem:[%s261_s1 + $0x18] sm:$0xff]   ;;  %v209_v5 = vld [vmem:[%s261_s1 + $0x20] sm:$0xff]   ;;  %v210_v6 = vld [vmem:[%s261_s1 + $0x28] sm:$0xff]  }
   0x3   :  { %185 = vmatprep.subr.bf16.mxu0 %v214_v0  ;;  %v211_v7 = vld [vmem:[%s261_s1 + $0x30] sm:$0xff]   ;;  %v212_v8 = vld [vmem:[%s261_s1 + $0x38] sm:$0xff]   ;;  %v213_v9 = vld [vmem:[%s262_s0] sm:$0xff]  }
   0x6   :  { %186 = vmatpush3.bf16.msra.mxu0 %v206_v2 }
   0x7   :  { %187 = vmatprep.subr.bf16.mxu0 %v214_v0 }
   0xa   :  { %188 = vmatpush3.bf16.msra.mxu0 %v207_v3 }
   0xb   :  { %189 = vmatprep.subr.bf16.mxu0 %v214_v0 }
   0xe   :  { %190 = vmatpush3.bf16.msra.mxu0 %v208_v4 }
   0xf   :  { %191 = vmatprep.subr.bf16.mxu0 %v214_v0 }
  0x12   :  { %192 = vmatpush3.bf16.msra.mxu0 %v209_v5 }
  0x13   :  { %193 = vmatprep.subr.bf16.mxu0 %v214_v0 }
  0x16   :  { %194 = vmatpush3.bf16.msra.mxu0 %v210_v6 }
  0x17   :  { %195 = vmatprep.subr.bf16.mxu0 %v214_v0 }
  0x1a   :  { %196 = vmatpush3.bf16.msra.mxu0 %v211_v7 }
  0x1b   :  { %197 = vmatprep.subr.bf16.mxu0 %v214_v0 }
  0x1e   :  { %198 = vmatpush3.bf16.msra.mxu0 %v212_v8 }
  0x21   :  { %200 = vmatmul.mubr.bf16.vlgmr.msra.gmra.mrb[0].mxu0 %v213_v9 }
  0xf4   :  { %v126_v10 = vpop.f32.mrb[0].mxu0 }
  0xf5   :  { %v201_v11 = vpop.f32.mrb[1].mxu0 }
  0xf6   :  { %v129_v12 = vpop.f32.mrb[2].mxu0 }
  0xf7   :  { %v172_v13 = vpack.c.bf16 %v129_v12, %v126_v10  ;;  %v202_v14 = vpop.f32.mrb[3].mxu0 }
  0xf9   :  { %173 = vst [vmem:[%s263_s2] sm:$0xff] %v172_v13  }

// kernel: dit_forward.13
= control target key start
LH: loop header
LB: loop body
LE: loop exit
PB: predicated region body
PF: predicated region fallthrough
CT: control target
= control target key end

     0   :  { %v210_v0 = vmov 0.0   ;;  %vm211_vm0 = vmmov 0   ;;  %s268_s1 = inlined_call_operand.vmem [shape: bf16[128,128], index: 1, kind: input, shape index: {}]   ;;  %s269_s0 = inlined_call_operand.vmem [shape: bf16[16,128], index: 0, kind: input, shape index: {}]   ;;  %s270_s2 = inlined_call_operand.vmem [shape: f32[1,128], index: 2, kind: input, shape index: {}]   ;;  %s271_s3 = inlined_call_operand.vmem [shape: f32[16,128], index: 3, kind: output, shape index: {}]  }
   0x1   :  { %179 = vmatprep.subr.bf16.mxu0 %v210_v0  ;;  %v201_v1 = vld [vmem:[%s268_s1] sm:$0xff]   ;;  %195 = vmatprep.mubr.msk.bf16.mxu0 %vm211_vm0, %v210_v0  ;;  %v202_v2 = vld [vmem:[%s268_s1 + $0x8] sm:$0xff]   ;;  %v203_v3 = vld [vmem:[%s268_s1 + $0x10] sm:$0xff]  }
   0x2   :  { %180 = vmatpush3.bf16.msra.mxu0 %v201_v1  ;;  %v204_v4 = vld [vmem:[%s268_s1 + $0x18] sm:$0xff]   ;;  %v205_v5 = vld [vmem:[%s268_s1 + $0x20] sm:$0xff]   ;;  %v206_v6 = vld [vmem:[%s268_s1 + $0x28] sm:$0xff]  }
   0x3   :  { %181 = vmatprep.subr.bf16.mxu0 %v210_v0  ;;  %v207_v7 = vld [vmem:[%s268_s1 + $0x30] sm:$0xff]   ;;  %v208_v8 = vld [vmem:[%s268_s1 + $0x38] sm:$0xff]   ;;  %v209_v9 = vld [vmem:[%s269_s0] sm:$0xff]  }
   0x4   :  { %v169_v10 = vld [vmem:[%s270_s2] ss:$0 sm:$0xff] }
   0x6   :  { %182 = vmatpush3.bf16.msra.mxu0 %v202_v2 }
   0x7   :  { %183 = vmatprep.subr.bf16.mxu0 %v210_v0 }
   0xa   :  { %184 = vmatpush3.bf16.msra.mxu0 %v203_v3 }
   0xb   :  { %185 = vmatprep.subr.bf16.mxu0 %v210_v0 }
   0xe   :  { %186 = vmatpush3.bf16.msra.mxu0 %v204_v4 }
   0xf   :  { %187 = vmatprep.subr.bf16.mxu0 %v210_v0 }
  0x12   :  { %188 = vmatpush3.bf16.msra.mxu0 %v205_v5 }
  0x13   :  { %189 = vmatprep.subr.bf16.mxu0 %v210_v0 }
  0x16   :  { %190 = vmatpush3.bf16.msra.mxu0 %v206_v6 }
  0x17   :  { %191 = vmatprep.subr.bf16.mxu0 %v210_v0 }
  0x1a   :  { %192 = vmatpush3.bf16.msra.mxu0 %v207_v7 }
  0x1b   :  { %193 = vmatprep.subr.bf16.mxu0 %v210_v0 }
  0x1e   :  { %194 = vmatpush3.bf16.msra.mxu0 %v208_v8 }
  0x21   :  { %196 = vmatmul.mubr.bf16.vlgmr.msra.gmra.mrb[0].mxu0 %v209_v9 }
  0xf4   :  { %v129_v11 = vpop.f32.mrb[0].mxu0 }
  0xf5   :  { %v152_v12 = vadd.f32 %v169_v10, %v129_v11  ;;  %v197_v13 = vpop.f32.mrb[1].mxu0 }
  0xf6   :  { %v132_v14 = vpop.f32.mrb[2].mxu0 }
  0xf7   :  { %154 = vst [vmem:[%s271_s3] sm:$0xff] %v152_v12  ;;  %v153_v15 = vadd.f32 %v169_v10, %v132_v14  ;;  %v198_v16 = vpop.f32.mrb[3].mxu0 }
  0xf9   :  { %155 = vst [vmem:[%s271_s3 + $0x8] sm:$0xff] %v153_v15 }

// kernel: dit_forward.15
= control target key start
LH: loop header
LB: loop body
LE: loop exit
PB: predicated region body
PF: predicated region fallthrough
CT: control target
= control target key end

     0   :  { %s1028_s0 = inlined_call_operand.vmem [shape: s32[2], index: 0, kind: input, shape index: {}]   ;;  %s1029_s1 = inlined_call_operand.vmem [shape: bf16[2,8,32], index: 1, kind: input, shape index: {}]   ;;  %s1030_s2 = inlined_call_operand.vmem [shape: bf16[2,8,32], index: 2, kind: input, shape index: {}]   ;;  %s1031_s3 = inlined_call_operand.vmem [shape: bf16[2,8,32], index: 3, kind: input, shape index: {}]   ;;  %s1032_s4 = inlined_call_operand.vmem [shape: f32[8,16], index: 4, kind: input, shape index: {}]   ;;  %s1033_s5 = inlined_call_operand.vmem [shape: f32[8,16], index: 5, kind: input, shape index: {}]   ;;  %s1034_s6 = inlined_call_operand.vmem [shape: bf16[2,8,32], index: 6, kind: output, shape index: {}]  }
   0x1   :  { %s11_s23 = sshll.u32 %s1028_s0, 4  ;;  %s12_s23 = int_to_ptr.vmem [resolvable:$true] %s11_s23 }
   0x2   :  { %s857_s24 = scalar_lea.vmem %s12_s23, 16  ;;  %p862_p1 = scmp.lt.s32.totalorder %s12_s23, %s12_s23 }
   0x3   :  { %p858_p0 = scmp.ne.s32.totalorder %s12_s23, %s857_s24  ;;  %p863_p2 = scmp.lt.s32.totalorder %s857_s24, %s857_s24 }
   0x5   :  { %p864_p3 = por %p863_p2, %p862_p1 }
   0x7   :  { %p865_p4 = pnand %p864_p3, %p858_p0 }
   0x9   :  { %868 = shalt.err (!%p865_p4)  }
   0xa   :  { %s895_s25 = smov [#allocation3]  }
   0xb   :  { %14 = dma.vmem_to_smem %s12_s23, 16, %s895_s25, [#allocation2] }
   0xc   :  { %881 = dma.done.wait [#allocation2], 16 }
   0xd   :  { %882 = vsyncadd [#allocation2], 4294967280 }
   0xe   :  { %16 = sfence }
   0xf   :  { %s941_s26 = smov 0   ;;  %s943_s27 = smov 0  }
  0x10   :  { %s945_s28 = smov 0  }
  0x11 LB: > { %s34_s0 = sadd.s32 1, %s889_s27  ;;  %p772_p5 = scmp.ge.s32.totalorder %s893_s28, 1  ;;  %s893_s28 = sphi %s945_s28, %s22_s28   ;;  %s889_s27 = sphi %s943_s27, %s1036_s27   ;;  %s885_s26 = sphi %s941_s26, %s1035_s26  }
  0x12   : > { %p36_p6 = scmp.ge.s32.totalorder %s34_s0, 2  ;;  %p230_p7 = scmp.lt.s32.totalorder %s893_s28, 3 }
  0x14   : > { %s1038_s0 = smov (%p36_p6, %s34_s0), 0  ;;  %p231_p8 = pnand %p772_p5, %p230_p7 }
  0x15   : > { %p270_p9 = scmp.lt.s32.totalorder (!%p231_p8), %s885_s26, 1  ;;  %s896_s13 = smov (!%p231_p8), 104   ;;  %v303_v6 = vld [vmem:[%s1032_s4] sm:$0xff] (!%p231_p8)  ;;  %vm319_vm0 = vcmask (!%p231_p8), 64512   ;;  %v899_v16 = vmov (!%p231_p8), 0.0   ;;  %vm900_vm1 = vmmov (!%p231_p8), 0   ;;  %v293_v39 = vlaneseq (!%p231_p8) }
  0x16   : > { %234 = sbr.rel (%p231_p8) target bundleno = 1258 (0x4ea), region = 40  ;;  %s897_s14 = smov (!%p231_p8), 120   ;;  %v304_v9 = vld [vmem:[%s1033_s5] sm:$0xff] (!%p231_p8)  ;;  %805 = vmatprep.subr.mxu0 (!%p231_p8), %v899_v16  ;;  %794 = vmatprep.subr.mxu1 (!%p231_p8), %v899_v16  ;;  %vm337_vm2 = vcmask (!%p231_p8), 130048   ;;  %vm433_vm4 = vcmask (!%p231_p8), 1043456   ;;  %vm664_vm5 = vcmask (!%p231_p8), 257024  }
  0x17   : > { %s898_s17 = smov (!%p231_p8), 16   ;;  %807 = vmatprep.mubr.msk.f32.mxu0 (!%p231_p8), %vm900_vm1, %v899_v16  ;;  %796 = vmatprep.mubr.msk.f32.mxu1 (!%p231_p8), %vm900_vm1, %v899_v16  ;;  %s901_s20 = smov (!%p231_p8), 112   ;;  %v294_v40 = vand.u32 (!%p231_p8), 127, %v293_v39 }
  0x18   : > { %s902_s21 = smov (!%p231_p8), 8   ;;  %s295_s22 = sld [smem:[#allocation3 + %s885_s26]] (!%p231_p8) }
  0x1d   : > { %s271_s29 = scalar_select %p270_p9, %s885_s26, 1 }
  0x1e   : > { %v296_v41 = vstv %s295_s22 }
  0x1f   : > { %s963_s30 = sshll.u32 %s271_s29, 2  ;;  %vm297_vm3 = vcmp.lt.s32.totalorder %v294_v40, %v296_v41 }
  0x20   : > { %s280_s9 = scalar_lea.vmem %s1030_s2, %s963_s30  ;;  %s276_s12 = scalar_lea.vmem %s1029_s1, %s963_s30 }
  0x21   : > { %v307_v0 = vld [vmem:[%s280_s9] sm:$0xf]  ;;  %s284_s25 = scalar_lea.vmem %s1031_s3, %s963_s30  ;;  %s291_s7 = scalar_lea.vmem %s1034_s6, %s963_s30 }
  0x22   : > { %v305_v1 = vld [vmem:[%s276_s12] sm:$0xf]  ;;  %v308_v2 = vunpack.c.l.bf16 %v307_v0 }
  0x23   : > { %v306_v3 = vunpack.c.l.bf16 %v305_v1  ;;  %v309_v62 = vld [vmem:[%s284_s25] sm:$0xf] }
  0x24   : > { %v324_v4 = vsub.f32 0.0, %v308_v2  ;;  %v334_v28 = vmul.f32 %v308_v2, %v303_v6  ;;  %v782_v63 = vcombine.low %v309_v62, %v309_v62  ;;  %v435_v0 = vsel %vm433_vm4, %v309_v62, 0 }
  0x25   : > { %v310_v5 = vsub.f32 0.0, %v306_v3  ;;  %v321_v33 = vmul.f32 %v306_v3, %v303_v6 }
  0x26   : > { %495 = vrot.lane.b32.xlu0 %v324_v4, %s896_s13 }
  0x27   : > { %477 = vrot.lane.b32.xlu1 %v310_v5, %s896_s13 }
  0x2a   : > { %498 = vrot.lane.b32.xlu0 %v308_v2, %s897_s14 }
  0x2b   : > { %480 = vrot.lane.b32.xlu1 %v306_v3, %s897_s14 }
  0x2e   : > { %503 = vrot.lane.b32.xlu0 %v303_v6, %s898_s17 }
  0x32   : > { %485 = vrot.lane.b32.xlu0 %v303_v6, %s898_s17 }
  0x98   : > { %v496_v7 = vpop.permute.xlu0 %495 }
  0x99   : > { %v478_v8 = vpop.permute.xlu1 %477 }
  0x9c   : > { %v499_v10 = vpop.permute.xlu0 %498 }
  0x9d   : > { %v481_v11 = vpop.permute.xlu1 %480  ;;  %v501_v12 = vsel %vm319_vm0, %v496_v7, %v499_v10 }
  0x9e   : > { %v507_v13 = vmul.f32 %v501_v12, %v304_v9  ;;  %v483_v14 = vsel %vm319_vm0, %v478_v8, %v481_v11 }
  0x9f   : > { %v489_v15 = vmul.f32 %v483_v14, %v304_v9 }
  0xa0   : > { %509 = vrot.lane.b32.xlu1 %v507_v13, %s898_s17  ;;  %v504_v17 = vpop.permute.xlu0 %503 }
  0xa1   : > { %v506_v18 = vmul.f32 %v504_v17, %v308_v2 }
  0xa4   : > { %491 = vrot.lane.b32.xlu1 %v489_v15, %s898_s17  ;;  %v486_v19 = vpop.permute.xlu0 %485 }
  0xa5   : > { %v488_v22 = vmul.f32 %v486_v19, %v306_v3 }
 0x112   : > { %v510_v20 = vpop.permute.xlu1 %509 }
 0x113   : > { %v512_v21 = vadd.f32 %v510_v20, %v506_v18 }
 0x115   : > { %517 = vrot.lane.b32.xlu0 %v512_v21, %s901_s20 }
 0x116   : > { %v492_v23 = vpop.permute.xlu1 %491 }
 0x117   : > { %v494_v24 = vadd.f32 %v492_v23, %v488_v22 }
 0x119   : > { %514 = vrot.lane.b32.xlu1 %v494_v24, %s901_s20  ;;  %326 = vrot.lane.b32.xlu0 %v324_v4, %s897_s14 }
 0x11d   : > { %330 = vrot.lane.b32.xlu1 %v308_v2, %s902_s21  ;;  %312 = vrot.lane.b32.xlu0 %v310_v5, %s897_s14 }
 0x121   : > { %316 = vrot.lane.b32.xlu1 %v306_v3, %s902_s21 }
 0x187   : > { %v518_v25 = vpop.permute.xlu0 %517 }
 0x188   : > { %806 = vmatpush3.xpose.msk.msra.mxu0 %vm337_vm2, %v518_v25 }
 0x189   : > { %810 = vmatprep.subr.bf16.mxu0 %v899_v16 }
 0x18b   : > { %v515_v26 = vpop.permute.xlu1 %514  ;;  %v327_v27 = vpop.permute.xlu0 %326 }
 0x18c   : > { %808 = vmatmul.mubr.msk.f32.vlgmr.msra.gmra.mrb[0].mxu0 %vm337_vm2, %v515_v26 }
 0x18d   : > { %812 = vmatprep.mubr.msk.bf16.mxu0 %vm900_vm1, %v899_v16 }
 0x18f   : > { %v331_v29 = vpop.permute.xlu1 %330  ;;  %v313_v32 = vpop.permute.xlu0 %312 }
 0x190   : > { %v333_v30 = vsel %vm319_vm0, %v327_v27, %v331_v29 }
 0x191   : > { %v335_v31 = vmul.f32 %v333_v30, %v304_v9 }
 0x193   : > { %v317_v34 = vpop.permute.xlu1 %316  ;;  %v336_v35 = vadd.f32 %v335_v31, %v334_v28 }
 0x194   : > { %v320_v36 = vsel %vm319_vm0, %v313_v32, %v317_v34 }
 0x195   : > { %v322_v37 = vmul.f32 %v320_v36, %v304_v9  ;;  %795 = vmatpush3.xpose.msk.msra.mxu1 %vm337_vm2, %v336_v35 }
 0x196   : > { %799 = vmatprep.subr.bf16.mxu1 %v899_v16 }
 0x197   : > { %v323_v38 = vadd.f32 %v322_v37, %v321_v33 }
 0x199   : > { %797 = vmatmul.mubr.msk.f32.vlgmr.msra.gmra.mrb[0].mxu1 %vm337_vm2, %v323_v38 }
 0x19a   : > { %801 = vmatprep.mubr.msk.bf16.mxu1 %vm900_vm1, %v899_v16  ;;  %800 = vmatpush3.bf16.msra.mxu1 %v435_v0 }
 0x25f   : > { %v589_v42 = vpop.f32.mrb[0].mxu0 }
 0x260   : > { %v593_v43 = vmul.f32 0.25, %v589_v42  ;;  %v809_v44 = vpop.f32.mrb[1].mxu0 }
 0x262   : > { %v594_v45 = vsel %vm297_vm3, %v593_v43, -1e+30 }
 0x263   : > { %v595_v46 = vsel %vm319_vm0, %v594_v45, -inf }
 0x264   : > { %596 = vmax.xlane.f32.xlu0 %v595_v46 }
 0x26c   : > { %v410_v47 = vpop.f32.mrb[0].mxu1 }
 0x26d   : > { %v414_v48 = vmul.f32 0.25, %v410_v47  ;;  %v798_v49 = vpop.f32.mrb[1].mxu1 }
 0x26f   : > { %v417_v50 = vsel %vm297_vm3, %v414_v48, -1e+30 }
 0x270   : > { %v418_v51 = vsel %vm319_vm0, %v417_v50, -inf }
 0x271   : > { %419 = vmax.xlane.f32.xlu1 %v418_v51 }
 0x2f1   : > { %v597_v52 = vpop.xlane.xlu0 %596 }
 0x2f2   : > { %v598_v53 = vsub.f32 %v594_v45, %v597_v52 }
 0x2f4   : > { %v599_v54 = vmul.f32 1.442695, %v598_v53 }
 0x2f6   : > { %849 = vpow2.f32 %v599_v54 }
 0x2fe   : > { %v420_v55 = vpop.xlane.xlu1 %419 }
 0x2ff   : > { %v421_v56 = vsub.f32 %v417_v50, %v420_v55 }
 0x300   : > { %v850_v57 = vpop.eup %849 }
 0x301   : > { %v422_v58 = vmul.f32 1.442695, %v421_v56  ;;  %v601_v59 = vsel %vm319_vm0, %v850_v57, 0.0 }
 0x302   : > { %602 = vadd.xlane.f32.xlu0 %v601_v59 }
 0x303   : > { %851 = vpow2.f32 %v422_v58 }
 0x30d   : > { %v852_v60 = vpop.eup %851 }
 0x30e   : > { %v424_v61 = vsel %vm319_vm0, %v852_v60, 0.0 }
 0x30f   : > { %425 = vadd.xlane.f32.xlu1 %v424_v61 }
 0x318   : > { %610 = vrot.lane.b32.xlu0 %v782_v63, %s901_s20 }
 0x38f   : > { %v603_v1 = vpop.xlane.xlu0 %602 }
 0x390   : > { %853 = vrcp.f32 %v603_v1 }
 0x393   : > { %v611_v2 = vpop.permute.xlu0 %610 }
 0x394   : > { %v616_v3 = vsel %vm433_vm4, %v611_v2, 0 }
 0x395   : > { %811 = vmatpush3.bf16.msra.mxu0 %v616_v3 }
 0x39a   : > { %v854_v4 = vpop.eup %853 }
 0x39b   : > { %v605_v5 = vmul.f32 %v854_v4, %v850_v57 }
 0x39c   : > { %v426_v6 = vpop.xlane.xlu1 %425 }
 0x39d   : > { %855 = vrcp.f32 %v426_v6  ;;  %v606_v7 = vpack.c.bf16 %v605_v5, %v605_v5 }
 0x39f   : > { %813 = vmatmul.mubr.msk.bf16.vlgmr.msra.gmra.mrb[4].mxu0 %vm319_vm0, %v606_v7 }
 0x3a7   : > { %v856_v8 = vpop.eup %855 }
 0x3a8   : > { %v428_v9 = vmul.f32 %v856_v8, %v852_v60 }
 0x3aa   : > { %v429_v10 = vpack.c.bf16 %v428_v9, %v428_v9 }
 0x3ac   : > { %802 = vmatmul.mubr.msk.bf16.vlgmr.msra.gmra.mrb[4].mxu1 %vm319_vm0, %v429_v10 }
 0x472   : > { %v652_v11 = vpop.f32.mrb[4].mxu0 }
 0x473   : > { %v814_v12 = vpop.f32.mrb[5].mxu0  ;;  %659 = vrot.lane.b32.xlu1 %v652_v11, %s898_s17 }
 0x474   : > { %v655_v13 = vpop.f32.mrb[6].mxu0 }
 0x475   : > { %v815_v14 = vpop.f32.mrb[7].mxu0 }
 0x47f   : > { %v471_v15 = vpop.f32.mrb[4].mxu1 }
 0x480   : > { %v803_v16 = vpop.f32.mrb[5].mxu1 }
 0x481   : > { %v474_v17 = vpop.f32.mrb[6].mxu1 }
 0x482   : > { %v804_v18 = vpop.f32.mrb[7].mxu1 }
 0x4e5   : > { %v660_v19 = vpop.permute.xlu1 %659 }
 0x4e6   : > { %v662_v20 = vsel %vm337_vm2, %v471_v15, %v660_v19 }
 0x4e7   : > { %v663_v21 = vpack.c.bf16 %v662_v20, %v662_v20 }
 0x4e9   : > { %665 = vst.msk [vmem:[%s291_s7] sm:$0xf] %vm664_vm5, %v663_v21 }
 0x4ea PF: > { %s22_s28 = sadd.s32 1, %s893_s28   ;;  %s1035_s26 = smov %s889_s27 }
 0x4eb   : > { %p19_p10 = scmp.ge.s32.totalorder %s22_s28, 4   ;;  %s1036_s27 = smov %s1038_s0 }
 0x4ed   :  { %21 = sbr.rel (!%p19_p10) target bundleno = 17 (0x11), region = 78 }

// kernel: dit_forward.17
= control target key start
LH: loop header
LB: loop body
LE: loop exit
PB: predicated region body
PF: predicated region fallthrough
CT: control target
= control target key end

     0   :  { %v503_v1 = vmov 0   ;;  %vm22_vm0 = vcmask 261120   ;;  %v504_v60 = vmov 0.0   ;;  %vm392_vm1 = vcmask 257024   ;;  %s617_s1 = inlined_call_operand.vmem [shape: bf16[32,256], index: 1, kind: input, shape index: {}]   ;;  %s618_s0 = inlined_call_operand.vmem [shape: bf16[16,32], index: 0, kind: input, shape index: {}]   ;;  %s619_s2 = inlined_call_operand.vmem [shape: bf16[32,256], index: 2, kind: input, shape index: {}]   ;;  %s620_s3 = inlined_call_operand.vmem [shape: bf16[256,32], index: 3, kind: input, shape index: {}]   ;;  %s621_s4 = inlined_call_operand.vmem [shape: bf16[16,32], index: 4, kind: output, shape index: {}]  }
   0x1   :  { %v458_v0 = vld [vmem:[%s617_s1 + $0x4] ss:$8 sps:$4 sm:$0xff]   ;;  %92 = vmatprep.mubr.bf16.mxu1 %v503_v1  ;;  %v460_v2 = vld [vmem:[%s617_s1] ss:$8 sps:$4 sm:$0xff]   ;;  %v461_v3 = vld [vmem:[%s617_s1 + $0x14] ss:$8 sps:$4 sm:$0xff]  }
   0x2   :  { %60 = vmatprep.subr.bf16.mxu1 %v458_v0  ;;  %v463_v4 = vld [vmem:[%s617_s1 + $0x10] ss:$8 sps:$4 sm:$0xff]   ;;  %v467_v5 = vld [vmem:[%s619_s2 + $0x4] ss:$8 sps:$4 sm:$0xff]   ;;  %v465_v7 = vld [vmem:[%s619_s2] ss:$8 sps:$4 sm:$0xff]  }
   0x3   :  { %61 = vmatpush1.bf16.msra.mxu1 %v460_v2  ;;  %v464_v6 = vld [vmem:[%s618_s0] sm:$0xff]   ;;  %v470_v8 = vld [vmem:[%s619_s2 + $0x14] ss:$8 sps:$4 sm:$0xff]   ;;  %v468_v9 = vld [vmem:[%s619_s2 + $0x10] ss:$8 sps:$4 sm:$0xff]   ;;  %23 = vst.msk [vmem:[#allocation2] sm:$0xff] %vm22_vm0, %v504_v60 }
   0x4   :  { %62 = vmatprep.subr.bf16.mxu1 %v461_v3  ;;  %v471_v10 = vld [vmem:[%s620_s3 + $0x40] sm:$0xff]   ;;  %v473_v12 = vld [vmem:[%s620_s3 + $0x48] sm:$0xff]   ;;  %v475_v14 = vld [vmem:[%s620_s3 + $0x50] sm:$0xff]   ;;  %24 = vst.msk [vmem:[#allocation2 + $0x8] sm:$0xff] %vm22_vm0, %v504_v60 }
   0x5   :  { %v472_v11 = vld [vmem:[%s620_s3] sm:$0xff]   ;;  %434 = vmatprep.subr.bf16.mxu0 %v471_v10  ;;  %v474_v13 = vld [vmem:[%s620_s3 + $0x8] sm:$0xff]   ;;  %v476_v15 = vld [vmem:[%s620_s3 + $0x10] sm:$0xff]  }
   0x6   :  { %435 = vmatpush3.bf16.msra.mxu0 %v472_v11  ;;  %v477_v16 = vld [vmem:[%s620_s3 + $0x58] sm:$0xff]   ;;  %v479_v18 = vld [vmem:[%s620_s3 + $0x60] sm:$0xff]   ;;  %v481_v20 = vld [vmem:[%s620_s3 + $0x68] sm:$0xff]  }
   0x7   :  { %63 = vmatpush1.bf16.msra.mxu1 %v463_v4  ;;  %436 = vmatprep.subr.bf16.mxu0 %v473_v12  ;;  %v478_v17 = vld [vmem:[%s620_s3 + $0x18] sm:$0xff]   ;;  %v480_v19 = vld [vmem:[%s620_s3 + $0x20] sm:$0xff]   ;;  %v482_v21 = vld [vmem:[%s620_s3 + $0x28] sm:$0xff]  }
   0x8   :  { %127 = vmatprep.subr.bf16.mxu1 %v467_v5  ;;  %v483_v22 = vld [vmem:[%s620_s3 + $0x70] sm:$0xff]   ;;  %v485_v24 = vld [vmem:[%s620_s3 + $0x78] sm:$0xff]  }
   0x9   :  { %v484_v23 = vld [vmem:[%s620_s3 + $0x30] sm:$0xff]   ;;  %v486_v25 = vld [vmem:[%s620_s3 + $0x38] sm:$0xff]  }
   0xa   :  { %404 = vmatmul.mubr.msk.bf16.vlgmr.msra.gmra.mrb[0].mxu1 %vm22_vm0, %v464_v6  ;;  %437 = vmatpush3.bf16.msra.mxu0 %v474_v13  ;;  %v202_v62 = vld [vmem:[#allocation2] sm:$0xff] }
   0xb   :  { %128 = vmatpush1.bf16.msra.mxu1 %v465_v7  ;;  %159 = vmatprep.mubr.bf16.mxu1 %v503_v1  ;;  %v203_v2 = vld [vmem:[#allocation2 + $0x8] sm:$0xff] }
   0xc   :  { %129 = vmatprep.subr.bf16.mxu1 %v470_v8  ;;  %438 = vmatprep.subr.bf16.mxu0 %v475_v14 }
   0xe   :  { %439 = vmatpush3.bf16.msra.mxu0 %v476_v15 }
   0xf   :  { %130 = vmatpush1.bf16.msra.mxu1 %v468_v9  ;;  %440 = vmatprep.subr.bf16.mxu0 %v477_v16 }
  0x12   :  { %409 = vmatmul.mubr.msk.bf16.vlgmr.msra.gmra.mrb[4].mxu1 %vm22_vm0, %v464_v6  ;;  %441 = vmatpush3.bf16.msra.mxu0 %v478_v17 }
  0x13   :  { %442 = vmatprep.subr.bf16.mxu0 %v479_v18 }
  0x16   :  { %443 = vmatpush3.bf16.msra.mxu0 %v480_v19 }
  0x17   :  { %444 = vmatprep.subr.bf16.mxu0 %v481_v20 }
  0x1a   :  { %445 = vmatpush3.bf16.msra.mxu0 %v482_v21 }
  0x1b   :  { %446 = vmatprep.subr.bf16.mxu0 %v483_v22 }
  0x1e   :  { %447 = vmatpush3.bf16.msra.mxu0 %v484_v23 }
  0x1f   :  { %448 = vmatprep.subr.bf16.mxu0 %v485_v24 }
  0x22   :  { %449 = vmatpush3.bf16.msra.mxu0 %v486_v25 }
  0xdd   :  { %v94_v26 = vpop.f32.mrb[0].mxu1 }
  0xde   :  { %v410_v27 = vmul.f32 -1.442695, %v94_v26  ;;  %v96_v28 = vpop.f32.mrb[1].mxu1 }
  0xdf   :  { %v411_v29 = vmul.f32 -1.442695, %v96_v28  ;;  %v98_v30 = vpop.f32.mrb[2].mxu1 }
  0xe0   :  { %487 = vpow2.f32 %v410_v27  ;;  %v412_v31 = vmul.f32 -1.442695, %v98_v30  ;;  %v100_v32 = vpop.f32.mrb[3].mxu1 }
  0xe1   :  { %489 = vpow2.f32 %v411_v29  ;;  %v413_v33 = vmul.f32 -1.442695, %v100_v32 }
  0xe2   :  { %491 = vpow2.f32 %v412_v31 }
  0xe3   :  { %493 = vpow2.f32 %v413_v33 }
  0xe5   :  { %v161_v34 = vpop.f32.mrb[4].mxu1 }
  0xe6   :  { %v163_v35 = vpop.f32.mrb[5].mxu1 }
  0xe7   :  { %v165_v36 = vpop.f32.mrb[6].mxu1 }
  0xe8   :  { %v167_v37 = vpop.f32.mrb[7].mxu1 }
  0xea   :  { %v488_v38 = vpop.eup %487 }
  0xeb   :  { %v490_v39 = vpop.eup %489  ;;  %v182_v40 = vadd.f32 1.0, %v488_v38 }
  0xec   :  { %v492_v41 = vpop.eup %491  ;;  %v183_v42 = vadd.f32 1.0, %v490_v39 }
  0xed   :  { %v494_v43 = vpop.eup %493  ;;  %495 = vrcp.f32 %v182_v40  ;;  %v184_v44 = vadd.f32 1.0, %v492_v41 }
  0xee   :  { %497 = vrcp.f32 %v183_v42  ;;  %v185_v45 = vadd.f32 1.0, %v494_v43 }
  0xef   :  { %499 = vrcp.f32 %v184_v44 }
  0xf0   :  { %501 = vrcp.f32 %v185_v45 }
  0xf7   :  { %v496_v46 = vpop.eup %495 }
  0xf8   :  { %v498_v47 = vpop.eup %497  ;;  %v194_v48 = vmul.f32 %v496_v46, %v94_v26 }
  0xf9   :  { %v500_v49 = vpop.eup %499  ;;  %v195_v50 = vmul.f32 %v498_v47, %v96_v28 }
  0xfa   :  { %v502_v51 = vpop.eup %501  ;;  %v196_v52 = vmul.f32 %v500_v49, %v98_v30  ;;  %v198_v53 = vmul.f32 %v194_v48, %v161_v34 }
  0xfb   :  { %v197_v54 = vmul.f32 %v502_v51, %v100_v32  ;;  %v199_v55 = vmul.f32 %v195_v50, %v163_v35 }
  0xfc   :  { %v200_v56 = vmul.f32 %v196_v52, %v165_v36 }
  0xfd   :  { %v201_v57 = vmul.f32 %v197_v54, %v167_v37 }
  0xfe   :  { %v204_v58 = vpack.c.bf16 %v200_v56, %v198_v53 }
  0xff   :  { %v205_v59 = vpack.c.bf16 %v201_v57, %v199_v55 }
 0x101   :  { %366 = vmatprep.mubr.bf16.mxu0 %v205_v59 }
 0x102   :  { %367 = vmatmul.mubr.bf16.vlgmr.msra.gmra.mrb[0].mxu0 %v204_v58 }
 0x1d5   :  { %v450_v61 = vpop.f32.mrb[0].mxu0 }
 0x1d6   :  { %v451_v63 = vpop.f32.mrb[1].mxu0 }
 0x1d7   :  { %v452_v0 = vadd.f32 %v451_v63, %v450_v61  ;;  %v453_v1 = vpop.f32.mrb[2].mxu0 }
 0x1d8   :  { %v454_v3 = vpop.f32.mrb[3].mxu0 }
 0x1d9   :  { %v375_v4 = vadd.f32 %v452_v0, %v202_v62  ;;  %v455_v5 = vadd.f32 %v454_v3, %v453_v1 }
 0x1db   :  { %377 = vst.msk [vmem:[#allocation2] sm:$0xff] %vm22_vm0, %v375_v4  ;;  %v376_v6 = vadd.f32 %v455_v5, %v203_v2 }
 0x1dd   :  { %378 = vst.msk [vmem:[#allocation2 + $0x8] sm:$0xff] %vm22_vm0, %v376_v6 }
 0x1e2   :  { %v382_v7 = vld [vmem:[#allocation2] sm:$0xff] }
 0x1e3   :  { %v432_v8 = vpack.c.bf16 %v382_v7, %v382_v7 }
 0x1e4   :  { %v383_v9 = vld [vmem:[#allocation2 + $0x8] sm:$0xff] }
 0x1e5   :  { %393 = vst.msk [vmem:[%s621_s4] sm:$0xf] %vm392_vm1, %v432_v8  ;;  %v433_v10 = vpack.c.bf16 %v383_v9, %v383_v9 }
 0x1e7   :  { %394 = vst.msk [vmem:[%s621_s4 + $0x4] sm:$0xf] %vm392_vm1, %v433_v10 }

// kernel: dit_forward.22
= control target key start
LH: loop header
LB: loop body
LE: loop exit
PB: predicated region body
PF: predicated region fallthrough
CT: control target
= control target key end

     0   :  { %v251_v0 = vmov 0.0   ;;  %vm252_vm0 = vmmov 0   ;;  %s306_s1 = inlined_call_operand.vmem [shape: bf16[128,128], index: 1, kind: input, shape index: {}]   ;;  %s307_s0 = inlined_call_operand.vmem [shape: bf16[16,128], index: 0, kind: input, shape index: {}]   ;;  %s308_s2 = inlined_call_operand.vmem [shape: f32[1,128], index: 2, kind: input, shape index: {}]   ;;  %s309_s3 = inlined_call_operand.vmem [shape: bf16[16,128], index: 3, kind: output, shape index: {}]  }
   0x1   :  { %212 = vmatprep.subr.bf16.mxu0 %v251_v0  ;;  %v234_v1 = vld [vmem:[%s306_s1] sm:$0xff]   ;;  %228 = vmatprep.mubr.msk.bf16.mxu0 %vm252_vm0, %v251_v0  ;;  %v235_v2 = vld [vmem:[%s306_s1 + $0x8] sm:$0xff]   ;;  %v236_v3 = vld [vmem:[%s306_s1 + $0x10] sm:$0xff]  }
   0x2   :  { %213 = vmatpush3.bf16.msra.mxu0 %v234_v1  ;;  %v237_v4 = vld [vmem:[%s306_s1 + $0x18] sm:$0xff]   ;;  %v238_v5 = vld [vmem:[%s306_s1 + $0x20] sm:$0xff]   ;;  %v239_v6 = vld [vmem:[%s306_s1 + $0x28] sm:$0xff]  }
   0x3   :  { %214 = vmatprep.subr.bf16.mxu0 %v251_v0  ;;  %v240_v7 = vld [vmem:[%s306_s1 + $0x30] sm:$0xff]   ;;  %v241_v8 = vld [vmem:[%s306_s1 + $0x38] sm:$0xff]   ;;  %v242_v9 = vld [vmem:[%s307_s0] sm:$0xff]  }
   0x4   :  { %v191_v10 = vld [vmem:[%s308_s2] ss:$0 sm:$0xff] }
   0x6   :  { %215 = vmatpush3.bf16.msra.mxu0 %v235_v2 }
   0x7   :  { %216 = vmatprep.subr.bf16.mxu0 %v251_v0 }
   0xa   :  { %217 = vmatpush3.bf16.msra.mxu0 %v236_v3 }
   0xb   :  { %218 = vmatprep.subr.bf16.mxu0 %v251_v0 }
   0xe   :  { %219 = vmatpush3.bf16.msra.mxu0 %v237_v4 }
   0xf   :  { %220 = vmatprep.subr.bf16.mxu0 %v251_v0 }
  0x12   :  { %221 = vmatpush3.bf16.msra.mxu0 %v238_v5 }
  0x13   :  { %222 = vmatprep.subr.bf16.mxu0 %v251_v0 }
  0x16   :  { %223 = vmatpush3.bf16.msra.mxu0 %v239_v6 }
  0x17   :  { %224 = vmatprep.subr.bf16.mxu0 %v251_v0 }
  0x1a   :  { %225 = vmatpush3.bf16.msra.mxu0 %v240_v7 }
  0x1b   :  { %226 = vmatprep.subr.bf16.mxu0 %v251_v0 }
  0x1e   :  { %227 = vmatpush3.bf16.msra.mxu0 %v241_v8 }
  0x21   :  { %229 = vmatmul.mubr.bf16.vlgmr.msra.gmra.mrb[0].mxu0 %v242_v9 }
  0xf4   :  { %v129_v11 = vpop.f32.mrb[0].mxu0 }
  0xf5   :  { %v152_v12 = vadd.f32 %v191_v10, %v129_v11  ;;  %v230_v13 = vpop.f32.mrb[1].mxu0 }
  0xf6   :  { %v132_v14 = vpop.f32.mrb[2].mxu0 }
  0xf7   :  { %v192_v15 = vmul.f32 -1.442695, %v152_v12  ;;  %v153_v16 = vadd.f32 %v191_v10, %v132_v14  ;;  %v231_v17 = vpop.f32.mrb[3].mxu0 }
  0xf9   :  { %243 = vpow2.f32 %v192_v15  ;;  %v193_v18 = vmul.f32 -1.442695, %v153_v16 }
  0xfb   :  { %245 = vpow2.f32 %v193_v18 }
 0x103   :  { %v244_v19 = vpop.eup %243 }
 0x104   :  { %v160_v20 = vadd.f32 1.0, %v244_v19 }
 0x105   :  { %v246_v21 = vpop.eup %245 }
 0x106   :  { %247 = vrcp.f32 %v160_v20  ;;  %v161_v22 = vadd.f32 1.0, %v246_v21 }
 0x108   :  { %249 = vrcp.f32 %v161_v22 }
 0x110   :  { %v248_v23 = vpop.eup %247 }
 0x111   :  { %v166_v25 = vmul.f32 %v248_v23, %v152_v12 }
 0x112   :  { %v250_v24 = vpop.eup %249 }
 0x113   :  { %v167_v26 = vmul.f32 %v250_v24, %v153_v16 }
 0x115   :  { %v201_v27 = vpack.c.bf16 %v167_v26, %v166_v25 }
 0x117   :  { %202 = vst [vmem:[%s309_s3] sm:$0xff] %v201_v27  }

</bundles_post_ra>
